<compile_context>
chip_gen: v7x
topology: tpu7x:2x2x1
jax: 0.10.0
libtpu: 0.0.40
codegen_flags: <defaults>
</compile_context>

<pallas_src>
import jax
import jax.numpy as jnp
from jax import lax
from jax.experimental import pallas as pl
from jax.experimental.pallas import tpu as pltpu


def _round_up(a, m):
    return ((a + m - 1) // m) * m


def _erf(z):
    # Abramowitz & Stegun 7.1.26 rational approximation (max abs err ~1.5e-7).
    # Elementwise VPU ops + one exp (EUP); avoids needing a lax.erf lowering.
    a1, a2, a3, a4, a5 = 0.254829592, -0.284496736, 1.421413741, -1.453152027, 1.061405429
    p = 0.3275911
    s = jnp.where(z >= 0.0, 1.0, -1.0)
    az = jnp.abs(z)
    # TODO(synk): pl.reciprocal(approx=True) here is a further VPU saving, but needs a
    # tolerance check against exact nn.GELU(); keep the exact divide for now.
    t = 1.0 / (1.0 + p * az)
    poly = ((((a5 * t + a4) * t + a3) * t + a2) * t + a1) * t
    return s * (1.0 - poly * jnp.exp(-az * az))


def _gelu_exact(x):
    # nn.GELU() default (exact erf form): 0.5 * x * (1 + erf(x / sqrt(2)))
    return 0.5 * x * (1.0 + _erf(x * 0.7071067811865476))


def attention_pool_kernel(x_ref, mask_ref, w1_ref, b1_ref, g_ref, beta_ref,
                          w2_ref, out_ref):
    x = x_ref[...]                                   # (BB, T, D), native dtype (f32/bf16)
    BB, T, D = x.shape

    # ---- Linear(D, D) on the MXU in the input dtype, f32 accumulation ----
    x2 = x.reshape(BB * T, D)                        # zero-cost view (T padded to sublane pack)
    h = jnp.dot(x2, w1_ref[...], preferred_element_type=jnp.float32) + b1_ref[...]

    # ---- LayerNorm(D), eps = 1e-5, two-pass (centered) variance like torch ----
    mu = jnp.mean(h, axis=-1, keepdims=True)
    c = h - mu
    var = jnp.mean(c * c, axis=-1, keepdims=True)
    h = c * lax.rsqrt(var + 1e-5)
    h = h * g_ref[...] + beta_ref[...]

    # ---- GELU (exact erf form) ----
    h = _gelu_exact(h)

    # ---- Linear(D, 1): per-token score; lane-dense (BB, T) logits ----
    # b2 dropped: softmax is shift-invariant and masked entries are -inf anyway.
    h3 = h.reshape(BB, T, D)
    logits = jnp.sum(h3 * w2_ref[...], axis=-1)      # (BB, T)

    # ---- mask (w[mask == 0] = -inf) and softmax over T (lane axis) ----
    # NOTE: a fully-masked row yields NaN (0/0), same as the PyTorch module.
    mask = mask_ref[...]                             # (BB, T) f32
    logits = jnp.where(mask == 0.0, -jnp.inf, logits)
    m = jnp.max(logits, axis=-1, keepdims=True)
    e = jnp.exp(logits - m)
    w = e * pl.reciprocal(jnp.sum(e, axis=-1, keepdims=True), approx=True)   # (BB, T) f32

    # ---- weighted pool over T on VPU/XLU, f32 weights & f32 accumulation ----
    pooled = jnp.sum(w[:, :, None] * x, axis=1)      # (BB, D) f32
    out_ref[...] = pooled.astype(out_ref.dtype)


def _auto_block_b(B, T_pad, D, itemsize):
    """Batch tile: VMEM-budgeted, DMA-sized, >=2 grid steps, sublane-dense."""
    if B <= 8:
        return B                                          # one full-batch tile
    # On-chip bytes per batch row per grid step:
    #   double-buffered x input tile             : 2 * T_pad * D * itemsize
    #   f32 h + LN/GELU/pool temporaries (~3 live): 12 * T_pad * D
    per_row = T_pad * D * (2 * itemsize + 12)
    bb_cap = max(1, (20 << 20) // per_row)                # ~20 MiB activation budget
    bb_cap = min(bb_cap, max(1, (6 << 20) // (T_pad * D * itemsize)))  # <=~6 MiB per x DMA
    n_steps = max(2, pl.cdiv(B, bb_cap))                  # keep >= 2 grid steps
    # Balanced tiles (minimal batch padding), rounded to sublane-dense multiples of 8.
    # TODO(synk): very long T x large D configs force >= 8 rows here and may need a
    # T-tiled (sequence-accumulating) variant to fit v7x's 64 MiB VMEM.
    return _round_up(pl.cdiv(B, n_steps), 8)


def attention_pool(x, mask, params, *, block_b=None, interpret=False):
    """x: (B, T, D) float (bf16 recommended in production); mask: (B, T); -> (B, D) f32."""
    B, T, D = x.shape
    itemsize = x.dtype.itemsize

    # Pad T to the sublane pack so (BB, T, D) <-> (BB*T, D) reshapes are free views.
    pack = {4: 8, 2: 16, 1: 32}.get(itemsize, 8)
    T_pad = _round_up(T, pack)

    if block_b is None:
        block_b = _auto_block_b(B, T_pad, D, itemsize)
    B_pad = _round_up(B, block_b)
    grid = (B_pad // block_b,)

    maskf = mask.astype(jnp.float32)
    if T_pad != T:
        x = jnp.pad(x, ((0, 0), (0, T_pad - T), (0, 0)))
        maskf = jnp.pad(maskf, ((0, 0), (0, T_pad - T)))          # pad tokens masked out
    if B_pad != B:
        x = jnp.pad(x, ((0, B_pad - B), (0, 0), (0, 0)))
        maskf = jnp.pad(maskf, ((0, B_pad - B), (0, 0)),
                        constant_values=1.0)                       # keep pad rows finite

    w1 = params["w1"].astype(x.dtype)                  # (D, D), applied as x @ w1
    b1 = params["b1"].reshape(1, D).astype(jnp.float32)
    g = params["gamma"].reshape(1, D).astype(jnp.float32)
    beta = params["beta"].reshape(1, D).astype(jnp.float32)
    w2 = params["w2"].reshape(1, D).astype(jnp.float32)

    # VMEM budget: double-buffered x tile + f32 temporaries + (double-buffered) weights.
    act_bytes = block_b * T_pad * D * (2 * itemsize + 12)
    w_bytes = 2 * (D * D * itemsize + 4 * D * 4)
    io_bytes = 2 * block_b * (T_pad + D) * 4
    vmem_limit = int(min(112 << 20,
                         max(32 << 20, act_bytes + w_bytes + io_bytes + (4 << 20))))

    out = pl.pallas_call(
        attention_pool_kernel,
        out_shape=jax.ShapeDtypeStruct((B_pad, D), jnp.float32),
        grid=grid,
        in_specs=[
            # x, batch-tiled; last two block dims are full-extent, so any block_b works.
            # TODO(synk): bump to pipeline_mode=pl.Buffered(3) if xprof shows exposed DMA.
            pl.BlockSpec((block_b, T_pad, D), lambda i: (i, 0, 0)),
            # mask, 2-D and lane+sublane dense (8 batch rows per vreg).
            pl.BlockSpec((block_b, T_pad), lambda i: (i, 0)),
            # Weights: constant index_maps -> resident in VMEM across grid steps.
            # TODO(synk): for large-D backbones, single-buffer these resident blocks
            # (pipeline_mode=pl.Buffered(1)) to free VMEM for a bigger x tile.
            pl.BlockSpec((D, D), lambda i: (0, 0)),                 # w1
            pl.BlockSpec((1, D), lambda i: (0, 0)),                 # b1
            pl.BlockSpec((1, D), lambda i: (0, 0)),                 # gamma
            pl.BlockSpec((1, D), lambda i: (0, 0)),                 # beta
            pl.BlockSpec((1, D), lambda i: (0, 0)),                 # w2
        ],
        out_specs=pl.BlockSpec((block_b, D), lambda i: (i, 0)),     # dense (B, D) slab
        compiler_params=pltpu.CompilerParams(
            dimension_semantics=("parallel",),       # batch tiles -> both TCs on v7x
            vmem_limit_bytes=vmem_limit,
        ),
        interpret=interpret,
    )(x, maskf, w1, b1, g, beta, w2)
    return out[:B]


def ref_forward(x, mask, params):
    """Pure-JAX reference matching the PyTorch AttentionPool.forward (incl. b2)."""
    xf = x.astype(jnp.float32)
    h = xf @ params["w1"].astype(jnp.float32) + params["b1"]
    mu = h.mean(-1, keepdims=True)
    var = ((h - mu) ** 2).mean(-1, keepdims=True)
    h = (h - mu) / jnp.sqrt(var + 1e-5) * params["gamma"] + params["beta"]
    h = jax.nn.gelu(h, approximate=False)
    w = h @ params["w2"].reshape(-1, 1) + params["b2"]            # (B, T, 1)
    w = jnp.where(mask[..., None] == 0, -jnp.inf, w)
    w = jax.nn.softmax(w, axis=1)
    return jnp.sum(w * xf, axis=1)


# TODO(synk): the transformer backbone (AutoModel), sliding-window segmentation,
# multi-sample dropout and the final LayerNorm + per-target fc heads of CustomModel
# are not kernelized here; this kernel covers the AttentionPool forward pass.

if __name__ == "__main__":
    # Deliberately awkward B/T (not multiples of the tile sizes) to exercise the new
    # pad-to-tile path; D lane-dense (multiple of 128).
    B, T, D = 12, 13, 128
    key = jax.random.PRNGKey(0)
    k1, k2, k3, k4, k5 = jax.random.split(key, 5)

    x = jax.random.normal(k1, (B, T, D), jnp.float32)
    lengths = (jnp.arange(B) % T) + 1                               # every row keeps >= 1 token
    mask = (jnp.arange(T)[None, :] < lengths[:, None]).astype(jnp.float32)   # (B, T)

    params = {
        "w1": jax.random.normal(k2, (D, D), jnp.float32) * (1.0 / jnp.sqrt(D)),
        "b1": jax.random.normal(k3, (D,), jnp.float32) * 0.1,
        "gamma": jnp.ones((D,), jnp.float32),
        "beta": jnp.zeros((D,), jnp.float32),
        "w2": jax.random.normal(k4, (D,), jnp.float32) * (1.0 / jnp.sqrt(D)),
        "b2": jax.random.normal(k5, (1,), jnp.float32) * 0.1,   # dropped in-kernel (shift-invariant)
    }
    ref = ref_forward(x, mask, params)

    # f32 path: auto block_b -> 8, grid=(2,); exercises B/T padding + the pipeline.
    out = jax.block_until_ready(attention_pool(x, mask, params))
    assert out.shape == (B, D)
    assert jnp.allclose(out, ref, atol=2e-3, rtol=2e-3), float(jnp.max(jnp.abs(out - ref)))

    # bf16 activations: recommended production path (half the HBM bytes, bf16 MXU
    # matmul with f32 accumulation, f32 elementwise chain and f32 softmax weights).
    out_bf16 = jax.block_until_ready(attention_pool(x.astype(jnp.bfloat16), mask, params))
    assert out_bf16.shape == (B, D)
    assert bool(jnp.all(jnp.isfinite(out_bf16)))
    assert jnp.allclose(out_bf16, ref, atol=0.1, rtol=0.1)

    print("KERNEL_OK")
</pallas_src>

<mosaic_0001>
module attributes {stable_mosaic.version = 11 : i64} {
  func.func @attention_pool_kernel(%arg0: i32, %arg1: memref<8x16x128xf32, #tpu.memory_space<vmem>>, %arg2: memref<8x16xf32, #tpu.memory_space<vmem>>, %arg3: memref<128x128xf32, #tpu.memory_space<vmem>>, %arg4: memref<1x128xf32, #tpu.memory_space<vmem>>, %arg5: memref<1x128xf32, #tpu.memory_space<vmem>>, %arg6: memref<1x128xf32, #tpu.memory_space<vmem>>, %arg7: memref<1x128xf32, #tpu.memory_space<vmem>>, %arg8: memref<8x128xf32, #tpu.memory_space<vmem>>) attributes {dimension_semantics = [#tpu.dimension_semantics<parallel>], iteration_bounds = array<i64: 2>, scalar_prefetch = 0 : i64, scratch_operands = 0 : i64, tpu.core_type = #tpu.core_type<tc>, window_params = [{transform_indices = @transform_0, window_bounds = array<i64: 8, 16, 128>}, {transform_indices = @transform_1, window_bounds = array<i64: 8, 16>}, {pipeline_mode = #tpu.pipeline_mode<synchronous>, transform_indices = @transform_2, window_bounds = array<i64: 128, 128>}, {pipeline_mode = #tpu.pipeline_mode<synchronous>, transform_indices = @transform_3, window_bounds = array<i64: 1, 128>}, {pipeline_mode = #tpu.pipeline_mode<synchronous>, transform_indices = @transform_4, window_bounds = array<i64: 1, 128>}, {pipeline_mode = #tpu.pipeline_mode<synchronous>, transform_indices = @transform_5, window_bounds = array<i64: 1, 128>}, {pipeline_mode = #tpu.pipeline_mode<synchronous>, transform_indices = @transform_6, window_bounds = array<i64: 1, 128>}, {transform_indices = @transform_7, window_bounds = array<i64: 8, 128>}]} {
    %c0 = arith.constant 0 : index
    %c0_0 = arith.constant 0 : index
    %c0_1 = arith.constant 0 : index
    %0 = vector.load %arg1[%c0, %c0_0, %c0_1] : memref<8x16x128xf32, #tpu.memory_space<vmem>>, vector<8x16x128xf32>
    %1 = vector.shape_cast %0 : vector<8x16x128xf32> to vector<128x128xf32>
    %c0_2 = arith.constant 0 : index
    %c0_3 = arith.constant 0 : index
    %2 = vector.load %arg3[%c0_2, %c0_3] : memref<128x128xf32, #tpu.memory_space<vmem>>, vector<128x128xf32>
    %cst = arith.constant dense<0.000000e+00> : vector<128x128xf32>
    %3 = tpu.matmul %1, %2, %cst {dimension_numbers = #tpu.dot_dimension_numbers<[1], [0], [0], [1], [0, 0, 1, 1], [], []>} : vector<128x128xf32>, vector<128x128xf32>, vector<128x128xf32> -> vector<128x128xf32>
    %c0_4 = arith.constant 0 : index
    %c0_5 = arith.constant 0 : index
    %4 = vector.load %arg4[%c0_4, %c0_5] : memref<1x128xf32, #tpu.memory_space<vmem>>, vector<1x128xf32>
    %5 = vector.broadcast %4 : vector<1x128xf32> to vector<128x128xf32>
    %6 = arith.addf %3, %5 : vector<128x128xf32>
    %cst_6 = arith.constant dense<0.000000e+00> : vector<128xf32>
    %7 = vector.multi_reduction <add>, %6, %cst_6 [1] : vector<128x128xf32> to vector<128xf32>
    %8 = vector.shape_cast %7 : vector<128xf32> to vector<128x1xf32>
    %cst_7 = arith.constant 1.280000e+02 : f32
    %9 = vector.broadcast %cst_7 : f32 to vector<128x1xf32>
    %10 = arith.divf %8, %9 : vector<128x1xf32>
    %11 = vector.broadcast %10 : vector<128x1xf32> to vector<128x128xf32>
    %12 = arith.subf %6, %11 : vector<128x128xf32>
    %13 = arith.mulf %12, %12 : vector<128x128xf32>
    %cst_8 = arith.constant dense<0.000000e+00> : vector<128xf32>
    %14 = vector.multi_reduction <add>, %13, %cst_8 [1] : vector<128x128xf32> to vector<128xf32>
    %15 = vector.shape_cast %14 : vector<128xf32> to vector<128x1xf32>
    %cst_9 = arith.constant 1.280000e+02 : f32
    %16 = vector.broadcast %cst_9 : f32 to vector<128x1xf32>
    %17 = arith.divf %15, %16 : vector<128x1xf32>
    %cst_10 = arith.constant 9.99999974E-6 : f32
    %18 = vector.broadcast %cst_10 : f32 to vector<128x1xf32>
    %19 = arith.addf %17, %18 : vector<128x1xf32>
    %20 = math.rsqrt %19 : vector<128x1xf32>
    %21 = vector.broadcast %20 : vector<128x1xf32> to vector<128x128xf32>
    %22 = arith.mulf %12, %21 : vector<128x128xf32>
    %c0_11 = arith.constant 0 : index
    %c0_12 = arith.constant 0 : index
    %23 = vector.load %arg5[%c0_11, %c0_12] : memref<1x128xf32, #tpu.memory_space<vmem>>, vector<1x128xf32>
    %24 = vector.broadcast %23 : vector<1x128xf32> to vector<128x128xf32>
    %25 = arith.mulf %22, %24 : vector<128x128xf32>
    %c0_13 = arith.constant 0 : index
    %c0_14 = arith.constant 0 : index
    %26 = vector.load %arg6[%c0_13, %c0_14] : memref<1x128xf32, #tpu.memory_space<vmem>>, vector<1x128xf32>
    %27 = vector.broadcast %26 : vector<1x128xf32> to vector<128x128xf32>
    %28 = arith.addf %25, %27 : vector<128x128xf32>
    %cst_15 = arith.constant 5.000000e-01 : f32
    %29 = vector.broadcast %cst_15 : f32 to vector<128x128xf32>
    %30 = arith.mulf %29, %28 : vector<128x128xf32>
    %cst_16 = arith.constant 0.707106769 : f32
    %31 = vector.broadcast %cst_16 : f32 to vector<128x128xf32>
    %32 = arith.mulf %28, %31 : vector<128x128xf32>
    %cst_17 = arith.constant 0.000000e+00 : f32
    %33 = vector.broadcast %cst_17 : f32 to vector<128x128xf32>
    %34 = arith.cmpf oge, %32, %33 : vector<128x128xf32>
    %cst_18 = arith.constant 1.000000e+00 : f32
    %cst_19 = arith.constant -1.000000e+00 : f32
    %35 = vector.broadcast %cst_18 : f32 to vector<128x128xf32>
    %36 = vector.broadcast %cst_19 : f32 to vector<128x128xf32>
    %37 = arith.select %34, %35, %36 : vector<128x128xi1>, vector<128x128xf32>
    %38 = math.absf %32 : vector<128x128xf32>
    %cst_20 = arith.constant 0.327591091 : f32
    %39 = vector.broadcast %cst_20 : f32 to vector<128x128xf32>
    %40 = arith.mulf %39, %38 : vector<128x128xf32>
    %cst_21 = arith.constant 1.000000e+00 : f32
    %41 = vector.broadcast %cst_21 : f32 to vector<128x128xf32>
    %42 = arith.addf %41, %40 : vector<128x128xf32>
    %cst_22 = arith.constant 1.000000e+00 : f32
    %43 = vector.broadcast %cst_22 : f32 to vector<128x128xf32>
    %44 = arith.divf %43, %42 : vector<128x128xf32>
    %cst_23 = arith.constant 1.06140542 : f32
    %45 = vector.broadcast %cst_23 : f32 to vector<128x128xf32>
    %46 = arith.mulf %45, %44 : vector<128x128xf32>
    %cst_24 = arith.constant -1.45315206 : f32
    %47 = vector.broadcast %cst_24 : f32 to vector<128x128xf32>
    %48 = arith.addf %46, %47 : vector<128x128xf32>
    %49 = arith.mulf %48, %44 : vector<128x128xf32>
    %cst_25 = arith.constant 1.42141378 : f32
    %50 = vector.broadcast %cst_25 : f32 to vector<128x128xf32>
    %51 = arith.addf %49, %50 : vector<128x128xf32>
    %52 = arith.mulf %51, %44 : vector<128x128xf32>
    %cst_26 = arith.constant -0.284496725 : f32
    %53 = vector.broadcast %cst_26 : f32 to vector<128x128xf32>
    %54 = arith.addf %52, %53 : vector<128x128xf32>
    %55 = arith.mulf %54, %44 : vector<128x128xf32>
    %cst_27 = arith.constant 0.254829586 : f32
    %56 = vector.broadcast %cst_27 : f32 to vector<128x128xf32>
    %57 = arith.addf %55, %56 : vector<128x128xf32>
    %58 = arith.mulf %57, %44 : vector<128x128xf32>
    %cst_28 = arith.constant 0.000000e+00 : f32
    %59 = vector.broadcast %cst_28 : f32 to vector<128x128xf32>
    %60 = arith.subf %59, %38 : vector<128x128xf32>
    %61 = arith.mulf %60, %38 : vector<128x128xf32>
    %62 = math.exp %61 : vector<128x128xf32>
    %63 = arith.mulf %58, %62 : vector<128x128xf32>
    %cst_29 = arith.constant 1.000000e+00 : f32
    %64 = vector.broadcast %cst_29 : f32 to vector<128x128xf32>
    %65 = arith.subf %64, %63 : vector<128x128xf32>
    %66 = arith.mulf %37, %65 : vector<128x128xf32>
    %cst_30 = arith.constant 1.000000e+00 : f32
    %67 = vector.broadcast %cst_30 : f32 to vector<128x128xf32>
    %68 = arith.addf %67, %66 : vector<128x128xf32>
    %69 = arith.mulf %30, %68 : vector<128x128xf32>
    %70 = vector.shape_cast %69 : vector<128x128xf32> to vector<8x16x128xf32>
    %c0_31 = arith.constant 0 : index
    %c0_32 = arith.constant 0 : index
    %71 = vector.load %arg7[%c0_31, %c0_32] : memref<1x128xf32, #tpu.memory_space<vmem>>, vector<1x128xf32>
    %72 = vector.shape_cast %71 : vector<1x128xf32> to vector<1x1x128xf32>
    %73 = vector.broadcast %72 : vector<1x1x128xf32> to vector<8x16x128xf32>
    %74 = arith.mulf %70, %73 : vector<8x16x128xf32>
    %cst_33 = arith.constant dense<0.000000e+00> : vector<8x16xf32>
    %75 = vector.multi_reduction <add>, %74, %cst_33 [2] : vector<8x16x128xf32> to vector<8x16xf32>
    %c0_34 = arith.constant 0 : index
    %c0_35 = arith.constant 0 : index
    %76 = vector.load %arg2[%c0_34, %c0_35] : memref<8x16xf32, #tpu.memory_space<vmem>>, vector<8x16xf32>
    %cst_36 = arith.constant 0.000000e+00 : f32
    %77 = vector.broadcast %cst_36 : f32 to vector<8x16xf32>
    %78 = arith.cmpf oeq, %76, %77 : vector<8x16xf32>
    %cst_37 = arith.constant 0xFF800000 : f32
    %79 = vector.broadcast %cst_37 : f32 to vector<8x16xf32>
    %80 = arith.select %78, %79, %75 : vector<8x16xi1>, vector<8x16xf32>
    %cst_38 = arith.constant dense<0xFF800000> : vector<8xf32>
    %81 = vector.multi_reduction <maximumf>, %80, %cst_38 [1] : vector<8x16xf32> to vector<8xf32>
    %82 = vector.shape_cast %81 : vector<8xf32> to vector<8x1xf32>
    %83 = vector.broadcast %82 : vector<8x1xf32> to vector<8x16xf32>
    %84 = arith.subf %80, %83 : vector<8x16xf32>
    %85 = math.exp %84 : vector<8x16xf32>
    %cst_39 = arith.constant dense<0.000000e+00> : vector<8xf32>
    %86 = vector.multi_reduction <add>, %85, %cst_39 [1] : vector<8x16xf32> to vector<8xf32>
    %87 = vector.shape_cast %86 : vector<8xf32> to vector<8x1xf32>
    %88 = tpu.reciprocal %87 {approx = true} : vector<8x1xf32> -> vector<8x1xf32>
    %89 = vector.broadcast %88 : vector<8x1xf32> to vector<8x16xf32>
    %90 = arith.mulf %85, %89 : vector<8x16xf32>
    %91 = vector.shape_cast %90 : vector<8x16xf32> to vector<8x16x1xf32>
    %92 = vector.broadcast %91 : vector<8x16x1xf32> to vector<8x16x128xf32>
    %93 = arith.mulf %92, %0 : vector<8x16x128xf32>
    %cst_40 = arith.constant dense<0.000000e+00> : vector<8x128xf32>
    %94 = vector.multi_reduction <add>, %93, %cst_40 [1] : vector<8x16x128xf32> to vector<8x128xf32>
    %c0_41 = arith.constant 0 : index
    %c0_42 = arith.constant 0 : index
    %95 = vector.load %arg8[%c0_41, %c0_42] : memref<8x128xf32, #tpu.memory_space<vmem>>, vector<8x128xf32>
    tpu.vector_store %arg8[%c0_41, %c0_42], %94 {strides = array<i32>} : memref<8x128xf32, #tpu.memory_space<vmem>>, vector<8x128xf32>,
    return
  }
  func.func @transform_0(%arg0: i32) -> (i32, i32, i32) {
    %c0_i32 = arith.constant 0 : i32
    %c0_i32_0 = arith.constant 0 : i32
    %c0_i32_1 = arith.constant 0 : i32
    return %arg0, %c0_i32, %c0_i32_0 : i32, i32, i32
  }
  func.func @transform_1(%arg0: i32) -> (i32, i32) {
    %c0_i32 = arith.constant 0 : i32
    %c0_i32_0 = arith.constant 0 : i32
    return %arg0, %c0_i32 : i32, i32
  }
  func.func @transform_2(%arg0: i32) -> (i32, i32) {
    %c0_i32 = arith.constant 0 : i32
    %c0_i32_0 = arith.constant 0 : i32
    %c0_i32_1 = arith.constant 0 : i32
    return %c0_i32, %c0_i32_0 : i32, i32
  }
  func.func @transform_3(%arg0: i32) -> (i32, i32) {
    %c0_i32 = arith.constant 0 : i32
    %c0_i32_0 = arith.constant 0 : i32
    %c0_i32_1 = arith.constant 0 : i32
    return %c0_i32, %c0_i32_0 : i32, i32
  }
  func.func @transform_4(%arg0: i32) -> (i32, i32) {
    %c0_i32 = arith.constant 0 : i32
    %c0_i32_0 = arith.constant 0 : i32
    %c0_i32_1 = arith.constant 0 : i32
    return %c0_i32, %c0_i32_0 : i32, i32
  }
  func.func @transform_5(%arg0: i32) -> (i32, i32) {
    %c0_i32 = arith.constant 0 : i32
    %c0_i32_0 = arith.constant 0 : i32
    %c0_i32_1 = arith.constant 0 : i32
    return %c0_i32, %c0_i32_0 : i32, i32
  }
  func.func @transform_6(%arg0: i32) -> (i32, i32) {
    %c0_i32 = arith.constant 0 : i32
    %c0_i32_0 = arith.constant 0 : i32
    %c0_i32_1 = arith.constant 0 : i32
    return %c0_i32, %c0_i32_0 : i32, i32
  }
  func.func @transform_7(%arg0: i32) -> (i32, i32) {
    %c0_i32 = arith.constant 0 : i32
    %c0_i32_0 = arith.constant 0 : i32
    return %arg0, %c0_i32 : i32, i32
  }
}

</mosaic_0001>

<bundles_post_ra>
// kernel: tpu_custom_call.1
= control target key start
LH: loop header
LB: loop body
LE: loop exit
PB: predicated region body
PF: predicated region fallthrough
CT: control target
= control target key end

     0   :  { %s3012_s0 = inlined_call_operand.hbm [shape: f32[16,16,128], index: 0, kind: input, shape index: {}]   ;;  %s3013_s1 = inlined_call_operand.hbm [shape: f32[16,16], index: 1, kind: input, shape index: {}]   ;;  %s3014_s2 = inlined_call_operand.hbm [shape: f32[128,128], index: 2, kind: input, shape index: {}]   ;;  %s3015_s3 = inlined_call_operand.vmem [shape: f32[1,128], index: 3, kind: input, shape index: {}]   ;;  %s3016_s4 = inlined_call_operand.vmem [shape: f32[1,128], index: 4, kind: input, shape index: {}]   ;;  %s3017_s5 = inlined_call_operand.vmem [shape: f32[1,128], index: 5, kind: input, shape index: {}]   ;;  %s3018_s6 = inlined_call_operand.vmem [shape: f32[1,128], index: 6, kind: input, shape index: {}]   ;;  %s3019_s7 = inlined_call_operand.hbm [shape: f32[16,128], index: 7, kind: output, shape index: {}]  }
   0x1   :  { %3029 = sst [smem:[#allocation16_spill]] %s3012_s0 }
   0x2   :  { %3030 = sst [smem:[#allocation17_spill]] %s3014_s2 }
   0x3   :  { %12 = vsyncpa [#allocation3], 0 }
   0x4   :  { %14 = vsyncpa [#allocation3 + $0x1], 0 }
   0x5   :  { %15 = vsyncpa [#allocation6], 0 }
   0x6   :  { %17 = vsyncpa [#allocation6 + $0x1], 0 }
   0x7   :  { %18 = vsyncpa [#allocation4], 0 }
   0x8   :  { %20 = vsyncpa [#allocation4 + $0x1], 0  ;;  %s2212_s24 = smov 0   ;;  %s2214_s25 = smov 0  }
   0x9   :  { %s2216_s26 = smov 0   ;;  %s2218_s27 = smov 0  }
   0xa LB: > { %3031 = sst [smem:[#allocation13_spill]] %s2159_s26  ;;  %s2233_s28 = sadd.s32 4294967295, %s2163_s27   ;;  %s2163_s27 = sphi %s2218_s27, %s3053_s27   ;;  %s2159_s26 = sphi %s2216_s26, %s3055_s26   ;;  %s2155_s25 = sphi %s2214_s25, %s3057_s25   ;;  %s2151_s24 = sphi %s2212_s24, %s3056_s24  }
   0xb   : > { %s1659_s29 = sadd.s32 4294967294, %s2163_s27   ;;  %p46_p0 = scmp.ne.s32.totalorder %s2155_s25, %s2151_s24 }
   0xc   : > { %p3020_p1 = scmp.eq.s32.totalorder %s2233_s28, 0  ;;  %p207_p3 = scmp.eq.s32.totalorder %s1659_s29, 1 }
   0xd   : > { %p1660_p5 = scmp.ge.s32.totalorder %s2163_s27, 1  ;;  %p214_p7 = scmp.lt.s32.totalorder %s2163_s27, 3 }
   0xe   : > { %p2242_p4 = por %p3020_p1, %p46_p0  ;;  %p2247_p6 = por %p207_p3, %p46_p0 }
   0xf   : > { %p2252_p8 = pnand %p1660_p5, %p214_p7  ;;  %s2165_s10 = smov [#allocation7]  }
  0x10   : > { %s3032_s30 = scalar_select %p2242_p4, 1, 0 }
  0x11   : > { %s3033_s8 = scalar_select %p2247_p6, 1, 0 }
  0x12   : > { %s3034_s9 = scalar_select %p2252_p8, 1, 0 }
  0x13   : > { %s226_s11 = sshll.u32 %s2165_s10, 4  ;;  %p1830_p9 = pneg %p2252_p8  ;;  %s2256_s11 = int_to_ptr.vmem [resolvable:$true] %s226_s11 }
  0x14   : > { %s2268_s13 = sadd.s32 1, %s2163_s27   ;;  %s33_s14 = sadd.s32 1, %s2159_s26 }
  0x15   : > { %p2263_p11 = pnand %p1830_p9, %p3020_p1  ;;  %3036 = sst [smem:[#allocation14_spill]] %s2268_s13 }
  0x16   : > { %s30_s15 = ssub.s32 %s2163_s27, %s2268_s13  ;;  %s3037_s2 = sld [smem:[#allocation17_spill]] }
  0x17   : > { %p2003_p13 = pneg %p2263_p11 }
  0x1c   : > { %s2001_s18 = scalar_lea.hbm %s3037_s2, 2048 }
  0x1d   : > { %p2002_p12 = scmp.ne.s32.totalorder %s3037_s2, %s2001_s18  ;;  %p2008_p5 = scmp.lt.u32.totalorder %s2001_s18, %s3037_s2 }
  0x1f   : > { %p2004_p0 = pnand %p2003_p13, %p2002_p12 }
  0x21   : > { %p2005_p3 = pneg %p2004_p0 }
  0x23   : > { %p2010_p7 = pnand %p2008_p5, %p2005_p3 }
  0x25   : > { %2013 = shalt.err (!%p2010_p7)
}
  0x26   : > { %s2014_s23 = scalar_lea.vmem %s2256_s11, 2048  ;;  %p2022_p2 = scmp.lt.s32.totalorder %s2256_s11, %s2256_s11 }
  0x27   : > { %p2015_p9 = scmp.ne.s32.totalorder %s2256_s11, %s2014_s23  ;;  %p2023_p6 = scmp.lt.s32.totalorder %s2014_s23, %s2014_s23 }
  0x29   : > { %p2017_p10 = pnand %p2015_p9, %p2003_p13  ;;  %p2024_p4 = por %p2023_p6, %p2022_p2 }
  0x2b   : > { %p2018_p1 = pneg %p2017_p10 }
  0x2d   : > { %p2025_p8 = pnand %p2024_p4, %p2018_p1 }
  0x2f   : > { %2028 = shalt.err (!%p2025_p8)
}
  0x30   : > { %s3023_s29 = smov 128   ;;  %s3024_s10 = smov 8  }
  0x31   : > { %1833 = dma.hbm_to_vmem [thread:$0]  (!%p2263_p11), %s3037_s2, 2048, %s2256_s11, [#allocation6], %s3023_s29, %s3023_s29, %s3024_s10  }
  0x32   : > { %p31_p1 = scmp.eq.s32.totalorder %s30_s15, 0  ;;  %p40_p2 = scmp.ne.s32.totalorder %s2159_s26, %s2155_s25 }
  0x33   : > { %p41_p4 = scmp.eq.s32.totalorder %s2163_s27, 0  ;;  %p1846_p6 = scmp.lt.s32.totalorder %s2163_s27, 2 }
  0x34   : > { %s2302_s18 = scalar_select %p31_p1, %s2159_s26, %s33_s14  }
  0x35   : > { %p42_p8 = por %p41_p4, %p40_p2  ;;  %p3039_p10 = scmp.eq.s32.totalorder %s2233_s28, 1 }
  0x36   : > { %3038 = sst [smem:[#allocation15_spill]] %s2302_s18  ;;  %s2311_s12 = sand.u32 1, %s2159_s26  }
  0x37   : > { %p2306_p12 = por %p3039_p10, %p40_p2  ;;  %s1683_s20 = sshll.u32 %s2163_s27, 11 }
  0x38   : > { %s1663_s21 = sshll.u32 %s2311_s12, 7  ;;  %s3041_s0 = sld [smem:[#allocation16_spill]] }
  0x39   : > { %s3040_s19 = scalar_select %p2306_p12, 1, 0 }
  0x3a   : > { %s256_s14 = scalar_lea.vmem [#allocation2], %s1663_s21  ;;  %p2320_p11 = pnand %p1846_p6, %p42_p8 }
  0x3b   : > { %s264_s23 = sshll.u32 %s256_s14, 4  ;;  %s253_s29 = scalar_lea.sflag [#allocation3], %s2311_s12  ;;  %s2324_s23 = int_to_ptr.vmem [resolvable:$true] %s264_s23 }
  0x3c   : > { %p2031_p0 = pneg %p2320_p11 }
  0x3e   : > { %s2318_s15 = scalar_lea.hbm %s3041_s0, %s1683_s20  ;;  %s2034_s11 = scalar_lea.hbm %s3041_s0, 4096 }
  0x3f   : > { %s2029_s10 = scalar_lea.hbm %s2318_s15, 2048  ;;  %p2035_p7 = scmp.lt.u32.totalorder %s2318_s15, %s3041_s0 }
  0x40   : > { %p2030_p13 = scmp.ne.s32.totalorder %s2318_s15, %s2029_s10  ;;  %p2036_p9 = scmp.lt.u32.totalorder %s2034_s11, %s2029_s10 }
  0x41   : > { %p2038_p2 = scmp.lt.u32.totalorder %s2029_s10, %s2318_s15 }
  0x42   : > { %p2032_p3 = pnand %p2031_p0, %p2030_p13  ;;  %p2037_p1 = por %p2036_p9, %p2035_p7 }
  0x44   : > { %p2033_p5 = pneg %p2032_p3  ;;  %p2039_p4 = por %p2038_p2, %p2037_p1 }
  0x46   : > { %p2040_p6 = pnand %p2039_p4, %p2033_p5 }
  0x48   : > { %2043 = shalt.err (!%p2040_p6)
}
  0x49   : > { %s2044_s17 = scalar_lea.vmem %s2324_s23, 2048  ;;  %s2168_s20 = smov [#allocation2]  }
  0x4a   : > { %p2045_p8 = scmp.ne.s32.totalorder %s2324_s23, %s2044_s17  ;;  %s2049_s21 = sshll.u32 %s2168_s20, 4  ;;  %s2050_s21 = int_to_ptr.vmem [resolvable:$false] %s2049_s21 }
  0x4b   : > { %s2051_s22 = scalar_lea.vmem %s2050_s21, 4096  ;;  %p2052_p3 = scmp.lt.s32.totalorder %s2324_s23, %s2050_s21 }
  0x4c   : > { %p2047_p10 = pnand %p2045_p8, %p2031_p0  ;;  %p2053_p7 = scmp.lt.s32.totalorder %s2051_s22, %s2044_s17 }
  0x4e   : > { %p2048_p13 = pneg %p2047_p10  ;;  %p2054_p9 = por %p2053_p7, %p2052_p3 }
  0x50   : > { %p2055_p1 = pnand %p2054_p9, %p2048_p13 }
  0x52   : > { %2058 = shalt.err (!%p2055_p1)
}
  0x53   : > { %s3043_s10 = smov 8   ;;  %s3044_s11 = smov 128  }
  0x54   : > { %1837 = dma.hbm_to_vmem [thread:$0]  (!%p2320_p11), %s2318_s15, 2048, %s2324_s23, %s253_s29, %s3044_s11, %s3044_s11, %s3043_s10  }
  0x55   : > { %s1667_s14 = sshll.u32 %s2311_s12, 3  ;;  %s1668_s20 = sshll.u32 %s2163_s27, 7 }
  0x56   : > { %s2363_s22 = scalar_lea.hbm %s3013_s1, %s1668_s20  ;;  %s278_s0 = scalar_lea.vmem [#allocation5], %s1667_s14 }
  0x57   : > { %s285_s2 = sshll.u32 %s278_s0, 4  ;;  %s3045_s18 = sand.u32 1, %s2163_s27   ;;  %s286_s2 = int_to_ptr.vmem [resolvable:$true] %s285_s2 }
  0x58   : > { %s275_s26 = scalar_lea.sflag [#allocation6], %s3045_s18  ;;  %s2059_s13 = scalar_lea.hbm %s2363_s22, 128 }
  0x59   : > { %p2060_p5 = scmp.ne.s32.totalorder %s2363_s22, %s2059_s13  ;;  %s2064_s15 = scalar_lea.hbm %s3013_s1, 256 }
  0x5a   : > { %p2065_p6 = scmp.lt.u32.totalorder %s2363_s22, %s3013_s1  ;;  %p2066_p8 = scmp.lt.u32.totalorder %s2064_s15, %s2059_s13 }
  0x5b   : > { %p2062_p2 = pnand %p2060_p5, %p2031_p0  ;;  %p2068_p13 = scmp.lt.u32.totalorder %s2059_s13, %s2363_s22 }
  0x5c   : > { %p2067_p10 = por %p2066_p8, %p2065_p6 }
  0x5d   : > { %p2063_p4 = pneg %p2062_p2 }
  0x5e   : > { %p2069_p3 = por %p2068_p13, %p2067_p10 }
  0x60   : > { %p2070_p7 = pnand %p2069_p3, %p2063_p4 }
  0x62   : > { %2073 = shalt.err (!%p2070_p7)
}
  0x63   : > { %s2074_s0 = scalar_lea.vmem %s286_s2, 128  ;;  %s2169_s18 = smov [#allocation5]  }
  0x64   : > { %p2075_p9 = scmp.ne.s32.totalorder %s286_s2, %s2074_s0  ;;  %s2079_s11 = sshll.u32 %s2169_s18, 4  ;;  %s2080_s11 = int_to_ptr.vmem [resolvable:$false] %s2079_s11 }
  0x65   : > { %s2081_s14 = scalar_lea.vmem %s2080_s11, 256  ;;  %p2082_p2 = scmp.lt.s32.totalorder %s286_s2, %s2080_s11 }
  0x66   : > { %p2077_p1 = pnand %p2075_p9, %p2031_p0  ;;  %p2083_p12 = scmp.lt.s32.totalorder %s2081_s14, %s2074_s0 }
  0x68   : > { %p2078_p5 = pneg %p2077_p1  ;;  %p2084_p6 = por %p2083_p12, %p2082_p2 }
  0x6a   : > { %p2085_p8 = pnand %p2084_p6, %p2078_p5 }
  0x6c   : > { %2088 = shalt.err (!%p2085_p8)
}
  0x6d   : > { %1840 = dma.hbm_to_vmem [thread:$0]  (!%p2320_p11), %s2363_s22, 128, %s286_s2, %s275_s26  }
  0x6e   : > { %p3046_p4 = scmp.ne.s32.totalorder %s3034_s9, 0 }
  0x6f   : > { %s2389_s13 = sand.u32 (!%p3046_p4), 1, %s2155_s25   ;;  %p3047_p12 = scmp.ne.s32.totalorder (!%p3046_p4), %s3032_s30, 0 }
  0x70   : > { %294 = sbr.rel (%p3046_p4) target bundleno = 1472 (0x5c0), region = 48  ;;  %s1670_s20 = sshll.u32 (!%p3046_p4), %s2389_s13, 7 }
  0x71   : > { %s297_s17 = scalar_lea.sflag (!%p3046_p4), [#allocation3], %s2389_s13  ;;  %s2393_s21 = scalar_lea.vmem (!%p3046_p4), [#allocation2], %s1670_s20 }
  0x77   : > { %2134 = dma.done.wait (%p3047_p12), %s297_s17, 2048  }
  0x78   : > { %2136 = vsyncadd (%p3047_p12), %s297_s17, 4294965248  ;;  %s305_s2 = sand.u32 1, %s2233_s28   ;;  %s1671_s26 = sshll.u32 %s2389_s13, 3 }
  0x79   : > { %s306_s9 = scalar_lea.sflag [#allocation6], %s305_s2  ;;  %s2403_s16 = scalar_lea.vmem [#allocation5], %s1671_s26 }
  0x7a   : > { %2138 = dma.done.wait (%p3047_p12), %s306_s9, 128  }
  0x7b   : > { %2140 = vsyncadd (%p3047_p12), %s306_s9, 4294967168  ;;  %p3048_p11 = scmp.eq.s32.totalorder %s2233_s28, 0 }
  0x7d   : > { %2142 = dma.done.wait (%p3048_p11), [#allocation6], 2048   ;;  %p3049_p0 = pmov %p3048_p11 }
  0x7e   : > { %v366_v0 = vld [vmem:[#allocation7] sm:$0xff]  ;;  %v367_v1 = vld [vmem:[#allocation7 + $0x8] sm:$0xff]  ;;  %v368_v2 = vld [vmem:[#allocation7 + $0x10] sm:$0xff]  ;;  %s1679_s18 = sshll.u32 %s2233_s28, 7  ;;  %s348_s11 = scalar_lea.vmem [#allocation8], %s1671_s26 }
  0x7f   : > { %2144 = vsyncadd (%p3049_p0), [#allocation6], 4294965248  ;;  %v1772_v3 = vpack.c.bf16 %v367_v1, %v366_v0  ;;  %v369_v4 = vld [vmem:[#allocation7 + $0x18] sm:$0xff]  ;;  %v370_v6 = vld [vmem:[#allocation7 + $0x20] sm:$0xff]  ;;  %s1557_s14 = sshll.u32 %s348_s11, 4  ;;  %s1544_s28 = scalar_lea.sflag [#allocation4], %s2389_s13  ;;  %s2969_s14 = int_to_ptr.vmem [resolvable:$true] %s1557_s14 }
  0x80   : > { %v1776_v5 = vpack.c.bf16 %v369_v4, %v368_v2  ;;  %v371_v7 = vld [vmem:[#allocation7 + $0x28] sm:$0xff]  ;;  %v350_v9 = vld [vmem:[%s2393_s21] sm:$0xff]  ;;  %v373_v12 = vld [vmem:[#allocation7 + $0x38] sm:$0xff]  ;;  %s2089_s2 = scalar_lea.vmem %s2969_s14, 128  ;;  %p3050_p13 = scmp.ne.s32.totalorder %s3040_s19, 0 }
  0x81   : > { %1773 = vmatprep.subr.bf16.mxu0 %v1772_v3  ;;  %1804 = vmatprep.subr.bf16.mxu1 %v1772_v3  ;;  %v1780_v8 = vpack.c.bf16 %v371_v7, %v370_v6  ;;  %v358_v10 = vld [vmem:[%s2393_s21 + $0x40] sm:$0xff]  ;;  %v374_v14 = vld [vmem:[#allocation7 + $0x40] sm:$0xff]  ;;  %v375_v15 = vld [vmem:[#allocation7 + $0x48] sm:$0xff]  ;;  %p2090_p10 = scmp.ne.s32.totalorder %s2969_s14, %s2089_s2  ;;  %s2171_s26 = smov [#allocation8]  }
  0x82   : > { %1775 = vmatpush3.bf16.msra.mxu0 %v1772_v3  ;;  %1812 = vmatpush3.bf16.msra.mxu1 %v1772_v3  ;;  %v372_v11 = vld [vmem:[#allocation7 + $0x30] sm:$0xff]  ;;  %v1788_v16 = vpack.c.bf16 %v375_v15, %v374_v14  ;;  %v377_v18 = vld [vmem:[#allocation7 + $0x58] sm:$0xff]  ;;  %v378_v20 = vld [vmem:[#allocation7 + $0x60] sm:$0xff]  ;;  %s2093_s9 = sshll.u32 %s2171_s26, 4  ;;  %s2094_s9 = int_to_ptr.vmem [resolvable:$false] %s2093_s9 }
  0x83   : > { %1777 = vmatprep.subr.bf16.mxu0 %v1776_v5  ;;  %1805 = vmatprep.subr.bf16.mxu1 %v1776_v5  ;;  %v1784_v13 = vpack.c.bf16 %v373_v12, %v372_v11  ;;  %v376_v17 = vld [vmem:[#allocation7 + $0x50] sm:$0xff]  ;;  %v379_v21 = vld [vmem:[#allocation7 + $0x68] sm:$0xff]  ;;  %v381_v24 = vld [vmem:[#allocation7 + $0x78] sm:$0xff]  ;;  %p2091_p3 = pnand %p2090_p10, %p3050_p13  ;;  %p2096_p9 = scmp.lt.s32.totalorder %s2969_s14, %s2094_s9 }
  0x84   : > { %1748 = vmatprep.mubr.f32.mxu0 %v350_v9  ;;  %1760 = vmatprep.mubr.f32.mxu1 %v358_v10  ;;  %v1792_v19 = vpack.c.bf16 %v377_v18, %v376_v17  ;;  %v1796_v22 = vpack.c.bf16 %v379_v21, %v378_v20  ;;  %v380_v23 = vld [vmem:[#allocation7 + $0x70] sm:$0xff]  ;;  %v351_v26 = vld [vmem:[%s2393_s21 + $0x8] sm:$0xff]  ;;  %v352_v28 = vld [vmem:[%s2393_s21 + $0x10] sm:$0xff] }
  0x85   : > { %v1800_v25 = vpack.c.bf16 %v381_v24, %v380_v23  ;;  %v359_v27 = vld [vmem:[%s2393_s21 + $0x48] sm:$0xff]  ;;  %v360_v29 = vld [vmem:[%s2393_s21 + $0x50] sm:$0xff]  ;;  %v353_v30 = vld [vmem:[%s2393_s21 + $0x18] sm:$0xff]  ;;  %p2092_p7 = pneg %p2091_p3 }
  0x86   : > { %1779 = vmatpush3.bf16.msra.mxu0 %v1776_v5  ;;  %1813 = vmatpush3.bf16.msra.mxu1 %v1776_v5  ;;  %v361_v31 = vld [vmem:[%s2393_s21 + $0x58] sm:$0xff]  ;;  %v354_v32 = vld [vmem:[%s2393_s21 + $0x20] sm:$0xff]  ;;  %v355_v34 = vld [vmem:[%s2393_s21 + $0x28] sm:$0xff] }
  0x87   : > { %1781 = vmatprep.subr.bf16.mxu0 %v1780_v8  ;;  %1806 = vmatprep.subr.bf16.mxu1 %v1780_v8  ;;  %v362_v33 = vld [vmem:[%s2393_s21 + $0x60] sm:$0xff]  ;;  %v363_v35 = vld [vmem:[%s2393_s21 + $0x68] sm:$0xff]  ;;  %v356_v36 = vld [vmem:[%s2393_s21 + $0x30] sm:$0xff] }
  0x88   : > { %v364_v37 = vld [vmem:[%s2393_s21 + $0x70] sm:$0xff]  ;;  %v357_v38 = vld [vmem:[%s2393_s21 + $0x38] sm:$0xff]  ;;  %v1674_v40 = vld [vmem:[%s3015_s3] ss:$0 sm:$0xff] }
  0x89   : > { %v365_v39 = vld [vmem:[%s2393_s21 + $0x78] sm:$0xff] }
  0x8a   : > { %1783 = vmatpush3.bf16.msra.mxu0 %v1780_v8  ;;  %1814 = vmatpush3.bf16.msra.mxu1 %v1780_v8 }
  0x8b   : > { %1785 = vmatprep.subr.bf16.mxu0 %v1784_v13  ;;  %1807 = vmatprep.subr.bf16.mxu1 %v1784_v13 }
  0x8e   : > { %1787 = vmatpush3.bf16.msra.mxu0 %v1784_v13  ;;  %1815 = vmatpush3.bf16.msra.mxu1 %v1784_v13 }
  0x8f   : > { %1789 = vmatprep.subr.bf16.mxu0 %v1788_v16  ;;  %1808 = vmatprep.subr.bf16.mxu1 %v1788_v16 }
  0x92   : > { %1791 = vmatpush3.bf16.msra.mxu0 %v1788_v16  ;;  %1816 = vmatpush3.bf16.msra.mxu1 %v1788_v16 }
  0x93   : > { %1793 = vmatprep.subr.bf16.mxu0 %v1792_v19  ;;  %1809 = vmatprep.subr.bf16.mxu1 %v1792_v19 }
  0x96   : > { %1795 = vmatpush3.bf16.msra.mxu0 %v1792_v19  ;;  %1817 = vmatpush3.bf16.msra.mxu1 %v1792_v19 }
  0x97   : > { %1797 = vmatprep.subr.bf16.mxu0 %v1796_v22  ;;  %1810 = vmatprep.subr.bf16.mxu1 %v1796_v22 }
  0x9a   : > { %1799 = vmatpush3.bf16.msra.mxu0 %v1796_v22  ;;  %1818 = vmatpush3.bf16.msra.mxu1 %v1796_v22 }
  0x9b   : > { %1801 = vmatprep.subr.bf16.mxu0 %v1800_v25  ;;  %1811 = vmatprep.subr.bf16.mxu1 %v1800_v25 }
  0x9e   : > { %1803 = vmatpush3.bf16.msra.mxu0 %v1800_v25  ;;  %1819 = vmatpush3.bf16.msra.mxu1 %v1800_v25 }
  0xa1   : > { %1749 = vmatmul.mubr.f32.vlgmr.msra.gmra.mrb[0].mxu0 %v351_v26  ;;  %1761 = vmatmul.mubr.f32.vlgmr.msra.gmra.mrb[0].mxu1 %v359_v27 }
  0xa2   : > { %1751 = vmatprep.mubr.f32.mxu0 %v352_v28  ;;  %1763 = vmatprep.mubr.f32.mxu1 %v360_v29 }
  0xa5   : > { %1752 = vmatmul.mubr.f32.gmra.mrb[2].mxu0 %v353_v30  ;;  %1764 = vmatmul.mubr.f32.gmra.mrb[2].mxu1 %v361_v31 }
  0xa6   : > { %1754 = vmatprep.mubr.f32.mxu0 %v354_v32  ;;  %1766 = vmatprep.mubr.f32.mxu1 %v362_v33 }
  0xa9   : > { %1755 = vmatmul.mubr.f32.gmra.mrb[4].mxu0 %v355_v34  ;;  %1767 = vmatmul.mubr.f32.gmra.mrb[4].mxu1 %v363_v35 }
  0xaa   : > { %1757 = vmatprep.mubr.f32.mxu0 %v356_v36  ;;  %1769 = vmatprep.mubr.f32.mxu1 %v364_v37 }
  0xad   : > { %1758 = vmatmul.mubr.f32.gmra.mrb[6].mxu0 %v357_v38  ;;  %1770 = vmatmul.mubr.f32.gmra.mrb[6].mxu1 %v365_v39 }
 0x174   : > { %v1750_v41 = vpop.f32.mrb[0].mxu0  ;;  %v1762_v42 = vpop.f32.mrb[0].mxu1 }
 0x175   : > { %v461_v43 = vadd.f32 %v1750_v41, %v1674_v40  ;;  %v501_v44 = vadd.f32 %v1762_v42, %v1674_v40  ;;  %v455_v45 = vpop.f32.mrb[1].mxu0  ;;  %v495_v46 = vpop.f32.mrb[1].mxu1 }
 0x176   : > { %v456_v49 = vadd.f32 %v1674_v40, %v455_v45  ;;  %v496_v56 = vadd.f32 %v1674_v40, %v495_v46 }
 0x177   : > { %552 = vadd.xlane.f32.xlu1 %v501_v44  ;;  %536 = vadd.xlane.f32.xlu0 %v461_v43 }
 0x178   : > { %v1753_v47 = vpop.f32.mrb[2].mxu0  ;;  %v1765_v48 = vpop.f32.mrb[2].mxu1 }
 0x179   : > { %v471_v50 = vadd.f32 %v1753_v47, %v1674_v40  ;;  %v465_v51 = vpop.f32.mrb[3].mxu0  ;;  %v505_v52 = vpop.f32.mrb[3].mxu1  ;;  %v511_v53 = vadd.f32 %v1765_v48, %v1674_v40 }
 0x17a   : > { %v466_v61 = vadd.f32 %v1674_v40, %v465_v51  ;;  %v506_v62 = vadd.f32 %v1674_v40, %v505_v52 }
 0x17b   : > { %540 = vadd.xlane.f32.xlu1 %v471_v50  ;;  %534 = vadd.xlane.f32.xlu0 %v456_v49 }
 0x17c   : > { %v1756_v54 = vpop.f32.mrb[4].mxu0  ;;  %v1768_v55 = vpop.f32.mrb[4].mxu1 }
 0x17d   : > { %v475_v57 = vpop.f32.mrb[5].mxu0  ;;  %v515_v58 = vpop.f32.mrb[5].mxu1  ;;  %v481_v1 = vadd.f32 %v1756_v54, %v1674_v40  ;;  %v2432_v3 = vadd.f32 %v1768_v55, %v1674_v40 }
 0x17e   : > { %v476_v2 = vadd.f32 %v1674_v40, %v475_v57  ;;  %v2434_v4 = vadd.f32 %v1674_v40, %v515_v58 }
 0x17f   : > { %556 = vadd.xlane.f32.xlu1 %v511_v53  ;;  %550 = vadd.xlane.f32.xlu0 %v496_v56 }
 0x180   : > { %v1759_v59 = vpop.f32.mrb[6].mxu0  ;;  %v1771_v60 = vpop.f32.mrb[6].mxu1 }
 0x181   : > { %v485_v63 = vpop.f32.mrb[7].mxu0  ;;  %v525_v0 = vpop.f32.mrb[7].mxu1  ;;  %v2436_v5 = vadd.f32 %v1759_v59, %v1674_v40  ;;  %v2442_v7 = vadd.f32 %v1771_v60, %v1674_v40 }
 0x182   : > { %v2440_v6 = vadd.f32 %v1674_v40, %v485_v63  ;;  %v2446_v8 = vadd.f32 %v1674_v40, %v525_v0 }
 0x183   : > { %538 = vadd.xlane.f32.xlu1 %v466_v61  ;;  %554 = vadd.xlane.f32.xlu0 %v506_v62 }
 0x187   : > { %544 = vadd.xlane.f32.xlu1 %v481_v1  ;;  %542 = vadd.xlane.f32.xlu0 %v476_v2 }
 0x18b   : > { %560 = vadd.xlane.f32.xlu1 %v2432_v3  ;;  %558 = vadd.xlane.f32.xlu0 %v2434_v4 }
 0x18f   : > { %548 = vadd.xlane.f32.xlu1 %v2436_v5  ;;  %546 = vadd.xlane.f32.xlu0 %v2440_v6 }
 0x193   : > { %564 = vadd.xlane.f32.xlu1 %v2442_v7  ;;  %562 = vadd.xlane.f32.xlu0 %v2446_v8 }
 0x204   : > { %v553_v9 = vpop.xlane.xlu1 %552  ;;  %v537_v10 = vpop.xlane.xlu0 %536 }
 0x205   : > { %v576_v11 = vmul.f32 0.0078125, %v553_v9  ;;  %v568_v12 = vmul.f32 0.0078125, %v537_v10 }
 0x207   : > { %v2450_v13 = vsub.f32 %v461_v43, %v568_v12  ;;  %v2452_v16 = vsub.f32 %v501_v44, %v576_v11 }
 0x208   : > { %v541_v14 = vpop.xlane.xlu1 %540  ;;  %v535_v15 = vpop.xlane.xlu0 %534 }
 0x209   : > { %v570_v17 = vmul.f32 0.0078125, %v541_v14  ;;  %v567_v18 = vmul.f32 0.0078125, %v535_v15  ;;  %v600_v19 = vmul.f32 %v2450_v13, %v2450_v13  ;;  %v608_v26 = vmul.f32 %v2452_v16, %v2452_v16 }
 0x20b   : > { %v2456_v20 = vsub.f32 %v456_v49, %v567_v18  ;;  %617 = vadd.xlane.f32.xlu1 %v600_v19  ;;  %v2458_v21 = vsub.f32 %v471_v50, %v570_v17 }
 0x20c   : > { %v557_v22 = vpop.xlane.xlu1 %556  ;;  %v551_v23 = vpop.xlane.xlu0 %550 }
 0x20d   : > { %v578_v24 = vmul.f32 0.0078125, %v557_v22  ;;  %v575_v25 = vmul.f32 0.0078125, %v551_v23  ;;  %v599_v27 = vmul.f32 %v2456_v20, %v2456_v20  ;;  %v602_v31 = vmul.f32 %v2458_v21, %v2458_v21 }
 0x20f   : > { %v2464_v28 = vsub.f32 %v496_v56, %v575_v25  ;;  %633 = vadd.xlane.f32.xlu1 %v608_v26  ;;  %615 = vadd.xlane.f32.xlu0 %v599_v27  ;;  %v2468_v32 = vsub.f32 %v511_v53, %v578_v24 }
 0x210   : > { %v539_v29 = vpop.xlane.xlu1 %538  ;;  %v555_v30 = vpop.xlane.xlu0 %554 }
 0x211   : > { %v569_v33 = vmul.f32 0.0078125, %v539_v29  ;;  %v577_v34 = vmul.f32 0.0078125, %v555_v30  ;;  %v607_v35 = vmul.f32 %v2464_v28, %v2464_v28  ;;  %v610_v42 = vmul.f32 %v2468_v32, %v2468_v32 }
 0x213   : > { %v2472_v36 = vsub.f32 %v466_v61, %v569_v33  ;;  %621 = vadd.xlane.f32.xlu1 %v602_v31  ;;  %631 = vadd.xlane.f32.xlu0 %v607_v35  ;;  %v2474_v37 = vsub.f32 %v506_v62, %v577_v34  ;;  %v2523_v34 = vld [vmem:[%s3016_s4] ss:$0 sm:$0xff] }
 0x214   : > { %v545_v38 = vpop.xlane.xlu1 %544  ;;  %v543_v39 = vpop.xlane.xlu0 %542 }
 0x215   : > { %v572_v40 = vmul.f32 0.0078125, %v545_v38  ;;  %v571_v41 = vmul.f32 0.0078125, %v543_v39  ;;  %v601_v43 = vmul.f32 %v2472_v36, %v2472_v36  ;;  %v609_v47 = vmul.f32 %v2474_v37, %v2474_v37 }
 0x217   : > { %v2480_v44 = vsub.f32 %v481_v1, %v572_v40  ;;  %637 = vadd.xlane.f32.xlu1 %v610_v42  ;;  %619 = vadd.xlane.f32.xlu0 %v601_v43  ;;  %v2484_v48 = vsub.f32 %v476_v2, %v571_v41  ;;  %v2529_v40 = vld [vmem:[%s3017_s5] ss:$0 sm:$0xff] }
 0x218   : > { %v561_v45 = vpop.xlane.xlu1 %560  ;;  %v559_v46 = vpop.xlane.xlu0 %558 }
 0x219   : > { %v580_v49 = vmul.f32 0.0078125, %v561_v45  ;;  %v579_v50 = vmul.f32 0.0078125, %v559_v46  ;;  %v604_v51 = vmul.f32 %v2480_v44, %v2480_v44  ;;  %v603_v59 = vmul.f32 %v2484_v48, %v2484_v48 }
 0x21b   : > { %v2489_v52 = vsub.f32 %v2432_v3, %v580_v49  ;;  %625 = vadd.xlane.f32.xlu1 %v604_v51  ;;  %635 = vadd.xlane.f32.xlu0 %v609_v47  ;;  %v2492_v53 = vsub.f32 %v2434_v4, %v579_v50 }
 0x21c   : > { %v549_v54 = vpop.xlane.xlu1 %548  ;;  %v547_v55 = vpop.xlane.xlu0 %546 }
 0x21d   : > { %v574_v56 = vmul.f32 0.0078125, %v549_v54  ;;  %v573_v57 = vmul.f32 0.0078125, %v547_v55  ;;  %v612_v58 = vmul.f32 %v2489_v52, %v2489_v52  ;;  %v611_v63 = vmul.f32 %v2492_v53, %v2492_v53 }
 0x21f   : > { %v2499_v60 = vsub.f32 %v2436_v5, %v574_v56  ;;  %641 = vadd.xlane.f32.xlu1 %v612_v58  ;;  %623 = vadd.xlane.f32.xlu0 %v603_v59  ;;  %v2504_v0 = vsub.f32 %v2440_v6, %v573_v57 }
 0x220   : > { %v565_v61 = vpop.xlane.xlu1 %564  ;;  %v563_v62 = vpop.xlane.xlu0 %562 }
 0x221   : > { %v582_v1 = vmul.f32 0.0078125, %v565_v61  ;;  %v581_v2 = vmul.f32 0.0078125, %v563_v62  ;;  %v606_v3 = vmul.f32 %v2499_v60, %v2499_v60  ;;  %v605_v6 = vmul.f32 %v2504_v0, %v2504_v0 }
 0x223   : > { %v2509_v4 = vsub.f32 %v2442_v7, %v582_v1  ;;  %629 = vadd.xlane.f32.xlu1 %v606_v3  ;;  %639 = vadd.xlane.f32.xlu0 %v611_v63  ;;  %v2512_v5 = vsub.f32 %v2446_v8, %v581_v2 }
 0x225   : > { %v614_v9 = vmul.f32 %v2509_v4, %v2509_v4  ;;  %v613_v10 = vmul.f32 %v2512_v5, %v2512_v5 }
 0x227   : > { %645 = vadd.xlane.f32.xlu1 %v614_v9  ;;  %627 = vadd.xlane.f32.xlu0 %v605_v6 }
 0x22b   : > { %643 = vadd.xlane.f32.xlu0 %v613_v10 }
 0x298   : > { %v618_v11 = vpop.xlane.xlu1 %617 }
 0x299   : > { %v648_v7 = vmul.f32 0.0078125, %v618_v11 }
 0x29b   : > { %v664_v12 = vadd.f32 1e-05, %v648_v7 }
 0x29c   : > { %v634_v14 = vpop.xlane.xlu1 %633  ;;  %v616_v15 = vpop.xlane.xlu0 %615 }
 0x29d   : > { %1885 = vrsqrt.f32 %v664_v12  ;;  %v656_v8 = vmul.f32 0.0078125, %v634_v14  ;;  %v647_v17 = vmul.f32 0.0078125, %v616_v15 }
 0x29f   : > { %v672_v18 = vadd.f32 1e-05, %v656_v8  ;;  %v663_v19 = vadd.f32 1e-05, %v647_v17 }
 0x2a0   : > { %v622_v22 = vpop.xlane.xlu1 %621  ;;  %v632_v23 = vpop.xlane.xlu0 %631 }
 0x2a1   : > { %1887 = vrsqrt.f32 %v672_v18  ;;  %v650_v24 = vmul.f32 0.0078125, %v622_v22  ;;  %v655_v25 = vmul.f32 0.0078125, %v632_v23 }
 0x2a2   : > { %1889 = vrsqrt.f32 %v663_v19 }
 0x2a3   : > { %v666_v26 = vadd.f32 1e-05, %v650_v24  ;;  %v671_v27 = vadd.f32 1e-05, %v655_v25 }
 0x2a4   : > { %v638_v29 = vpop.xlane.xlu1 %637  ;;  %v620_v30 = vpop.xlane.xlu0 %619 }
 0x2a5   : > { %1891 = vrsqrt.f32 %v666_v26  ;;  %v658_v33 = vmul.f32 0.0078125, %v638_v29  ;;  %v649_v45 = vmul.f32 0.0078125, %v620_v30 }
 0x2a6   : > { %1893 = vrsqrt.f32 %v671_v27 }
 0x2a7   : > { %v1886_v31 = vpop.eup %1885  ;;  %v674_v43 = vadd.f32 1e-05, %v658_v33  ;;  %v665_v59 = vadd.f32 1e-05, %v649_v45  ;;  %v2170_v33 = vmov -1.0  }
 0x2a8   : > { %v626_v35 = vpop.xlane.xlu1 %625  ;;  %v636_v38 = vpop.xlane.xlu0 %635  ;;  %v696_v39 = vmul.f32 %v1886_v31, %v2450_v13 }
 0x2a9   : > { %v652_v46 = vmul.f32 0.0078125, %v626_v35  ;;  %v657_v55 = vmul.f32 0.0078125, %v636_v38  ;;  %1895 = vrsqrt.f32 %v674_v43 }
 0x2aa   : > { %v719_v41 = vmul.f32 %v2523_v34, %v696_v39  ;;  %1897 = vrsqrt.f32 %v665_v59 }
 0x2ab   : > { %v1888_v42 = vpop.eup %1887  ;;  %v668_v61 = vadd.f32 1e-05, %v652_v46  ;;  %v673_v3 = vadd.f32 1e-05, %v657_v55 }
 0x2ac   : > { %v1890_v47 = vpop.eup %1889  ;;  %v642_v49 = vpop.xlane.xlu1 %641  ;;  %v742_v51 = vadd.f32 %v2529_v40, %v719_v41  ;;  %v704_v54 = vmul.f32 %v1888_v42, %v2452_v16 }
 0x2ad   : > { %v624_v50 = vpop.xlane.xlu0 %623  ;;  %v695_v13 = vmul.f32 %v1890_v47, %v2456_v20  ;;  %v660_v62 = vmul.f32 0.0078125, %v642_v49  ;;  %1899 = vrsqrt.f32 %v668_v61 }
 0x2ae   : > { %v774_v56 = vmul.f32 0.70710677, %v742_v51  ;;  %v727_v57 = vmul.f32 %v2523_v34, %v704_v54  ;;  %v651_v11 = vmul.f32 0.0078125, %v624_v50  ;;  %1901 = vrsqrt.f32 %v673_v3 }
 0x2af   : > { %v1892_v58 = vpop.eup %1891  ;;  %v718_v2 = vmul.f32 %v2523_v34, %v695_v13  ;;  %v676_v12 = vadd.f32 1e-05, %v660_v62  ;;  %v2542_v26 = vmul.f32 0.5, %v742_v51 }
 0x2b0   : > { %v822_v63 = vand.u32 2147483647, %v774_v56  ;;  %v750_v1 = vadd.f32 %v2529_v40, %v727_v57  ;;  %v630_v9 = vpop.xlane.xlu1 %629  ;;  %v698_v16 = vmul.f32 %v1892_v58, %v2458_v21  ;;  %v1894_v6 = vpop.eup %1893  ;;  %vm790_vm0 = vcmp.ge.f32.partialorder %v774_v56, 0.0 }
 0x2b1   : > { %v640_v10 = vpop.xlane.xlu0 %639  ;;  %v741_v15 = vadd.f32 %v2529_v40, %v718_v2  ;;  %v654_v8 = vmul.f32 0.0078125, %v630_v9  ;;  %v703_v18 = vmul.f32 %v1894_v6, %v2464_v28  ;;  %v667_v23 = vadd.f32 1e-05, %v651_v11 }
 0x2b2   : > { %v838_v20 = vmul.f32 0.3275911, %v822_v63  ;;  %v782_v7 = vmul.f32 0.70710677, %v750_v1  ;;  %v721_v17 = vmul.f32 %v2523_v34, %v698_v16  ;;  %v659_v19 = vmul.f32 0.0078125, %v640_v10 }
 0x2b3   : > { %v1046_v21 = vsub.f32 0.0, %v822_v63  ;;  %v773_v29 = vmul.f32 0.70710677, %v741_v15  ;;  %v1896_v30 = vpop.eup %1895  ;;  %v670_v31 = vadd.f32 1e-05, %v654_v8  ;;  %v2545_v35 = vsel %vm790_vm0, 1.0, %v2170_v33 }
 0x2b4   : > { %v854_v14 = vadd.f32 1.0, %v838_v20  ;;  %v830_v22 = vand.u32 2147483647, %v782_v7  ;;  %v646_v24 = vpop.xlane.xlu1 %645  ;;  %v744_v28 = vadd.f32 %v2529_v40, %v721_v17  ;;  %v726_v38 = vmul.f32 %v2523_v34, %v703_v18  ;;  %v1898_v51 = vpop.eup %1897 }
 0x2b5   : > { %v628_v25 = vpop.xlane.xlu0 %627  ;;  %v675_v39 = vadd.f32 1e-05, %v659_v19  ;;  %v662_v41 = vmul.f32 0.0078125, %v646_v24  ;;  %v1062_v42 = vmul.f32 %v1046_v21, %v822_v63  ;;  %v2549_v46 = vmul.f32 0.5, %v750_v1 }
 0x2b6   : > { %1903 = vrcp.f32 %v854_v14  ;;  %v846_v27 = vmul.f32 0.3275911, %v830_v22  ;;  %v653_v45 = vmul.f32 0.0078125, %v628_v25  ;;  %v821_v47 = vand.u32 2147483647, %v773_v29 }
 0x2b7   : > { %1905 = vrsqrt.f32 %v676_v12  ;;  %vm798_vm1 = vcmp.ge.f32.partialorder %v782_v7, 0.0  ;;  %v2551_v49 = vmul.f32 0.70710677, %v744_v28  ;;  %v749_v50 = vadd.f32 %v2529_v40, %v726_v38  ;;  %v1900_v56 = vpop.eup %1899 }
 0x2b8   : > { %v862_v43 = vadd.f32 1.0, %v846_v27  ;;  %1907 = vrsqrt.f32 %v667_v23  ;;  %v1054_v54 = vsub.f32 0.0, %v830_v22  ;;  %v837_v55 = vmul.f32 0.3275911, %v821_v47  ;;  %v2556_v61 = vpop.eup %1901 }
 0x2b9   : > { %v706_v13 = vmul.f32 %v1896_v30, %v2468_v32  ;;  %v678_v57 = vadd.f32 1e-05, %v662_v41  ;;  %v1079_v58 = vmul.f32 1.442695, %v1062_v42  ;;  %v824_v59 = vand.u32 2147483647, %v2551_v49 }
 0x2ba   : > { %1909 = vrcp.f32 %v862_v43  ;;  %v2558_v62 = vadd.f32 1e-05, %v653_v45  ;;  %v2562_v63 = vsel %vm798_vm1, 1.0, %v2170_v33  ;;  %v853_v1 = vadd.f32 1.0, %v837_v55 }
 0x2bb   : > { %1911 = vrsqrt.f32 %v670_v31  ;;  %v781_v2 = vmul.f32 0.70710677, %v749_v50  ;;  %vm789_vm2 = vcmp.ge.f32.partialorder %v773_v29, 0.0  ;;  %v840_v3 = vmul.f32 0.3275911, %v824_v59 }
 0x2bc   : > { %1913 = vrsqrt.f32 %v675_v39  ;;  %v729_v32 = vmul.f32 %v2523_v34, %v706_v13  ;;  %v697_v9 = vmul.f32 %v1898_v51, %v2472_v36  ;;  %v1070_v6 = vmul.f32 %v1054_v54, %v830_v22 }
 0x2bd   : > { %1915 = vrcp.f32 %v853_v1  ;;  %v1045_v10 = vsub.f32 0.0, %v821_v47  ;;  %v829_v20 = vand.u32 2147483647, %v781_v2  ;;  %v2571_v12 = vmul.f32 0.5, %v741_v15 }
 0x2be   : > { %1917 = vpow2.f32 %v1079_v58  ;;  %v856_v14 = vadd.f32 1.0, %v840_v3  ;;  %v2574_v8 = vsel %vm789_vm2, 1.0, %v2170_v33  ;;  %v2577_v36 = vadd.f32 %v2529_v40, %v729_v32 }
 0x2bf   : > { %1919 = vrsqrt.f32 %v678_v57  ;;  %v845_v17 = vmul.f32 0.3275911, %v829_v20  ;;  %v2579_v19 = vmul.f32 0.5, %v744_v28  ;;  %v720_v21 = vmul.f32 %v2523_v34, %v697_v9 }
 0x2c0   : > { %v2566_v16 = vpop.eup %1903  ;;  %1921 = vrcp.f32 %v856_v14  ;;  %v1095_v23 = vmul.f32 1.442695, %v1070_v6  ;;  %v1061_v15 = vmul.f32 %v1045_v10, %v821_v47  ;;  %v2585_v25 = vmul.f32 0.70710677, %v2577_v36 }
 0x2c1   : > { %v2568_v11 = vpop.eup %1905  ;;  %v902_v7 = vmul.f32 1.0614054, %v2566_v16  ;;  %v861_v24 = vadd.f32 1.0, %v845_v17  ;;  %vm792_vm3 = vcmp.ge.f32.partialorder %v2551_v49, 0.0  ;;  %v2592_v30 = vadd.f32 %v2529_v40, %v720_v21 }
 0x2c2   : > { %v2582_v22 = vpop.eup %1907  ;;  %v700_v31 = vmul.f32 %v1900_v56, %v2480_v44  ;;  %v1048_v39 = vsub.f32 0.0, %v824_v59  ;;  %v2598_v41 = vmul.f32 0.5, %v749_v50  ;;  %vm797_vm4 = vcmp.ge.f32.partialorder %v781_v2, 0.0 }
 0x2c3   : > { %v918_v18 = vadd.f32 -1.4531521, %v902_v7  ;;  %1923 = vrcp.f32 %v861_v24  ;;  %v1053_v45 = vsub.f32 0.0, %v829_v20  ;;  %v832_v47 = vand.u32 2147483647, %v2585_v25 }
 0x2c4   : > { %v2587_v27 = vpop.eup %1909  ;;  %1925 = vpow2.f32 %v1095_v23  ;;  %v1077_v54 = vmul.f32 1.442695, %v1061_v15  ;;  %v2604_v44 = vmul.f32 0.70710677, %v2592_v30  ;;  %v2610_v50 = vsel %vm792_vm3, 1.0, %v2170_v33 }
 0x2c5   : > { %v934_v29 = vmul.f32 %v2566_v16, %v918_v18  ;;  %v2595_v28 = vpop.eup %1911  ;;  %v910_v38 = vmul.f32 1.0614054, %v2587_v27  ;;  %v848_v13 = vmul.f32 0.3275911, %v832_v47  ;;  %v723_v56 = vmul.f32 %v2523_v34, %v700_v31 }
 0x2c6   : > { %v2600_v42 = vpop.eup %1913  ;;  %v1064_v1 = vmul.f32 %v1048_v39, %v824_v59  ;;  %v2617_v2 = vsel %vm797_vm4, 1.0, %v2170_v33  ;;  %v823_v3 = vand.u32 2147483647, %v2604_v44  ;;  %v1069_v49 = vmul.f32 %v1053_v45, %v829_v20 }
 0x2c7   : > { %v950_v43 = vadd.f32 1.4214138, %v934_v29  ;;  %v926_v51 = vadd.f32 -1.4531521, %v910_v38  ;;  %v2613_v57 = vpop.eup %1915  ;;  %v864_v10 = vadd.f32 1.0, %v848_v13  ;;  %1927 = vpow2.f32 %v1077_v54 }
 0x2c8   : > { %v1918_v32 = vpop.eup %1917  ;;  %v901_v6 = vmul.f32 1.0614054, %v2613_v57  ;;  %v1056_v17 = vsub.f32 0.0, %v832_v47  ;;  %v839_v18 = vmul.f32 0.3275911, %v823_v3  ;;  %v2627_v15 = vadd.f32 %v2529_v40, %v723_v56 }
 0x2c9   : > { %v966_v55 = vmul.f32 %v2566_v16, %v950_v43  ;;  %v942_v58 = vmul.f32 %v2587_v27, %v926_v51  ;;  %v2621_v7 = vpop.eup %1919  ;;  %1929 = vrcp.f32 %v864_v10  ;;  %v1047_v31 = vsub.f32 0.0, %v823_v3 }
 0x2ca   : > { %v2623_v21 = vpop.eup %1921  ;;  %v917_v23 = vadd.f32 -1.4531521, %v901_v6  ;;  %v855_v29 = vadd.f32 1.0, %v839_v18  ;;  %v1083_v43 = vmul.f32 1.442695, %v1064_v1  ;;  %v705_v13 = vmul.f32 %v2556_v61, %v2474_v37 }
 0x2cb   : > { %v982_v9 = vadd.f32 -0.28449672, %v966_v55  ;;  %v958_v14 = vadd.f32 1.4214138, %v942_v58  ;;  %v904_v20 = vmul.f32 1.0614054, %v2623_v21  ;;  %v1063_v18 = vmul.f32 %v1047_v31, %v823_v3 }
 0x2cc   : > { %v933_v39 = vmul.f32 %v2613_v57, %v917_v23  ;;  %v1093_v45 = vmul.f32 1.442695, %v1069_v49  ;;  %1931 = vrcp.f32 %v855_v29  ;;  %v2639_v6 = vmul.f32 0.70710677, %v2627_v15 }
 0x2cd   : > { %v998_v59 = vmul.f32 %v2566_v16, %v982_v9  ;;  %v974_v24 = vmul.f32 %v2587_v27, %v958_v14  ;;  %v2632_v51 = vpop.eup %1923  ;;  %v920_v55 = vadd.f32 -1.4531521, %v904_v20  ;;  %v1072_v14 = vmul.f32 %v1056_v17, %v832_v47 }
 0x2ce   : > { %v949_v58 = vadd.f32 1.4214138, %v933_v39  ;;  %v909_v9 = vmul.f32 1.0614054, %v2632_v51  ;;  %v1926_v10 = vpop.eup %1925  ;;  %1933 = vpow2.f32 %v1083_v43  ;;  %v826_v39 = vand.u32 2147483647, %v2639_v6 }
 0x2cf   : > { %v1014_v38 = vadd.f32 0.2548296, %v998_v59  ;;  %v990_v54 = vadd.f32 -0.28449672, %v974_v24  ;;  %v936_v49 = vmul.f32 %v2623_v21, %v920_v55  ;;  %1935 = vpow2.f32 %v1093_v45 }
 0x2d0   : > { %v965_v23 = vmul.f32 %v2613_v57, %v949_v58  ;;  %v925_v37 = vadd.f32 -1.4531521, %v909_v9  ;;  %v728_v24 = vmul.f32 %v2523_v34, %v705_v13  ;;  %v1081_v17 = vmul.f32 1.442695, %v1063_v18 }
 0x2d1   : > { %v1030_v56 = vmul.f32 %v2566_v16, %v1014_v38  ;;  %v1006_v1 = vmul.f32 %v2587_v27, %v990_v54  ;;  %v952_v16 = vadd.f32 1.4214138, %v936_v49  ;;  %v1928_v54 = vpop.eup %1927  ;;  %v842_v13 = vmul.f32 0.3275911, %v826_v39 }
 0x2d2   : > { %v981_v29 = vadd.f32 -0.28449672, %v965_v23  ;;  %v941_v38 = vmul.f32 %v2632_v51, %v925_v37  ;;  %vm800_vm5 = vcmp.ge.f32.partialorder %v2585_v25, 0.0  ;;  %vm791_vm6 = vcmp.ge.f32.partialorder %v2604_v44, 0.0 }
 0x2d3   : > { %v1110_v59 = vmul.f32 %v1918_v32, %v1030_v56  ;;  %v1022_v61 = vadd.f32 0.2548296, %v1006_v1  ;;  %v968_v3 = vmul.f32 %v2623_v21, %v952_v16  ;;  %v1099_v32 = vmul.f32 1.442695, %v1072_v14  ;;  %v2649_v31 = vpop.eup %1929 }
 0x2d4   : > { %v997_v45 = vmul.f32 %v2613_v57, %v981_v29  ;;  %v957_v55 = vadd.f32 1.4214138, %v941_v38  ;;  %v912_v9 = vmul.f32 1.0614054, %v2649_v31  ;;  %v2655_v1 = vadd.f32 %v2529_v40, %v728_v24 }
 0x2d5   : > { %v1126_v20 = vsub.f32 1.0, %v1110_v59  ;;  %v1038_v47 = vmul.f32 %v2587_v27, %v1022_v61  ;;  %v984_v58 = vadd.f32 -0.28449672, %v968_v3  ;;  %v858_v18 = vadd.f32 1.0, %v842_v13 }
 0x2d6   : > { %v1013_v49 = vadd.f32 0.2548296, %v997_v45  ;;  %v973_v14 = vmul.f32 %v2632_v51, %v957_v55  ;;  %v2658_v59 = vpop.eup %1931  ;;  %v928_v37 = vadd.f32 -1.4531521, %v912_v9  ;;  %v1050_v61 = vsub.f32 0.0, %v826_v39 }
 0x2d7   : > { %v1142_v43 = vmul.f32 %v1126_v20, %v2545_v35  ;;  %v1118_v56 = vmul.f32 %v1926_v10, %v1038_v47  ;;  %v2663_v35 = vld [vmem:[%s3018_s6] ss:$0 sm:$0xff]  ;;  %v1000_v10 = vmul.f32 %v2623_v21, %v984_v58  ;;  %v903_v29 = vmul.f32 1.0614054, %v2658_v59 }
 0x2d8   : > { %v1029_v24 = vmul.f32 %v2613_v57, %v1013_v49  ;;  %v989_v20 = vadd.f32 -0.28449672, %v973_v14  ;;  %v944_v3 = vmul.f32 %v2649_v31, %v928_v37  ;;  %1937 = vrcp.f32 %v858_v18 }
 0x2d9   : > { %v1158_v27 = vadd.f32 1.0, %v1142_v43  ;;  %v1134_v23 = vsub.f32 1.0, %v1118_v56  ;;  %v1016_v47 = vadd.f32 0.2548296, %v1000_v10  ;;  %v1934_v43 = vpop.eup %1933  ;;  %v919_v56 = vadd.f32 -1.4531521, %v903_v29 }
 0x2da   : > { %v1109_v55 = vmul.f32 %v1928_v54, %v1029_v24  ;;  %v1005_v13 = vmul.f32 %v2632_v51, %v989_v20  ;;  %v1936_v58 = vpop.eup %1935  ;;  %v960_v9 = vadd.f32 1.4214138, %v944_v3  ;;  %1939 = vpow2.f32 %v1099_v32 }
 0x2db   : > { %v1174_v16 = vmul.f32 %v1158_v27, %v2542_v26  ;;  %v1150_v38 = vmul.f32 %v1134_v23, %v2562_v63  ;;  %v1032_v57 = vmul.f32 %v2623_v21, %v1016_v47  ;;  %v2675_v27 = vmul.f32 0.70710677, %v2655_v1 }
 0x2dc   : > { %v1125_v63 = vsub.f32 1.0, %v1109_v55  ;;  %v1021_v49 = vadd.f32 0.2548296, %v1005_v13  ;;  %v935_v14 = vmul.f32 %v2658_v59, %v919_v56  ;;  %v976_v23 = vmul.f32 %v2649_v31, %v960_v9 }
 0x2dd   : > { %v1197_v45 = vmul.f32 %v2663_v35, %v1174_v16  ;;  %v1166_v26 = vadd.f32 1.0, %v1150_v38  ;;  %v1112_v54 = vmul.f32 %v1934_v43, %v1032_v57  ;;  %1941 = vpow2.f32 %v1081_v17 }
 0x2de   : > { %v1141_v10 = vmul.f32 %v1125_v63, %v2574_v8  ;;  %v1037_v21 = vmul.f32 %v2632_v51, %v1021_v49  ;;  %v951_v37 = vadd.f32 1.4214138, %v935_v14  ;;  %v1066_v16 = vmul.f32 %v1050_v61, %v826_v39 }
 0x2df   : > { %1214 = vadd.xlane.f32.xlu1 %v1197_v45  ;;  %v1182_v18 = vmul.f32 %v1166_v26, %v2549_v46  ;;  %v1128_v20 = vsub.f32 1.0, %v1112_v54  ;;  %v992_v29 = vadd.f32 -0.28449672, %v976_v23  ;;  %v2684_v32 = vand.u32 2147483647, %v2675_v27 }
 0x2e0   : > { %v1157_v38 = vadd.f32 1.0, %v1141_v10  ;;  %v1117_v47 = vmul.f32 %v1936_v58, %v1037_v21  ;;  %v967_v46 = vmul.f32 %v2658_v59, %v951_v37  ;;  %v708_v17 = vmul.f32 %v2568_v11, %v2489_v52 }
 0x2e1   : > { %v1205_v24 = vmul.f32 %v2663_v35, %v1182_v18  ;;  %v1144_v8 = vmul.f32 %v1128_v20, %v2610_v50  ;;  %v1008_v51 = vmul.f32 %v2649_v31, %v992_v29  ;;  %v847_v39 = vmul.f32 0.3275911, %v2684_v32 }
 0x2e2   : > { %v1173_v61 = vmul.f32 %v1157_v38, %v2571_v12  ;;  %v1133_v3 = vsub.f32 1.0, %v1117_v47  ;;  %v983_v43 = vadd.f32 -0.28449672, %v967_v46  ;;  %v731_v45 = vmul.f32 %v2523_v34, %v708_v17  ;;  %v2695_v55 = vpop.eup %1937 }
 0x2e3   : > { %1230 = vadd.xlane.f32.xlu1 %v1205_v24  ;;  %v1160_v13 = vadd.f32 1.0, %v1144_v8  ;;  %v1024_v56 = vadd.f32 0.2548296, %v1008_v51  ;;  %v1087_v52 = vmul.f32 1.442695, %v1066_v16  ;;  %v863_v11 = vadd.f32 1.0, %v847_v39 }
 0x2e4   : > { %v1196_v50 = vmul.f32 %v2663_v35, %v1173_v61  ;;  %v1149_v58 = vmul.f32 %v1133_v3, %v2617_v2  ;;  %v999_v26 = vmul.f32 %v2658_v59, %v983_v43  ;;  %v906_v57 = vmul.f32 1.0614054, %v2695_v55  ;;  %v1940_v49 = vpop.eup %1939  ;;  %v644_v43 = vpop.xlane.xlu0 %643 }
 0x2e5   : > { %v1176_v12 = vmul.f32 %v1160_v13, %v2579_v19  ;;  %v816_v9 = vsel %vm800_vm5, 1.0, %v2170_v33  ;;  %v1040_v63 = vmul.f32 %v2649_v31, %v1024_v56  ;;  %1943 = vrcp.f32 %v863_v11 }
 0x2e6   : > { %1212 = vadd.xlane.f32.xlu0 %v1196_v50  ;;  %v1165_v14 = vadd.f32 1.0, %v1149_v58  ;;  %v1015_v18 = vadd.f32 0.2548296, %v999_v26  ;;  %v922_v54 = vadd.f32 -1.4531521, %v906_v57  ;;  %v2707_v2 = vadd.f32 %v2529_v40, %v731_v45 }
 0x2e7   : > { %v1942_v23 = vpop.eup %1941  ;;  %v1199_v10 = vmul.f32 %v2663_v35, %v1176_v12  ;;  %v1120_v21 = vmul.f32 %v1940_v49, %v1040_v63  ;;  %v699_v19 = vmul.f32 %v2582_v22, %v2484_v48  ;;  %1945 = vpow2.f32 %v1087_v52 }
 0x2e8   : > { %v1181_v25 = vmul.f32 %v1165_v14, %v2598_v41  ;;  %v1031_v31 = vmul.f32 %v2658_v59, %v1015_v18  ;;  %v938_v37 = vmul.f32 %v2695_v55, %v922_v54  ;;  %v2717_v24 = vmul.f32 0.70710677, %v2707_v2 }
 0x2e9   : > { %1218 = vadd.xlane.f32.xlu1 %v1199_v10  ;;  %v1136_v16 = vsub.f32 1.0, %v1120_v21  ;;  %v722_v20 = vmul.f32 %v2523_v34, %v699_v19  ;;  %v702_v29 = vmul.f32 %v2595_v28, %v2499_v60  ;;  %v1055_v41 = vsub.f32 0.0, %v2684_v32 }
 0x2ea   : > { %v1204_v38 = vmul.f32 %v2663_v35, %v1181_v25  ;;  %v1111_v48 = vmul.f32 %v1942_v23, %v1031_v31  ;;  %v954_v22 = vadd.f32 1.4214138, %v938_v37  ;;  %v2725_v47 = vand.u32 2147483647, %v2717_v24 }
 0x2eb   : > { %v1152_v59 = vmul.f32 %v1136_v16, %v816_v9  ;;  %v2728_v46 = vadd.f32 %v2529_v40, %v722_v20  ;;  %v707_v17 = vmul.f32 %v2600_v42, %v2492_v53  ;;  %1947 = vrsqrt.f32 %v2558_v62 }
 0x2ec   : > { %1228 = vadd.xlane.f32.xlu0 %v1204_v38  ;;  %v1127_v60 = vsub.f32 1.0, %v1111_v48  ;;  %v970_v28 = vmul.f32 %v2695_v55, %v954_v22  ;;  %v725_v8 = vmul.f32 %v2523_v34, %v702_v29  ;;  %v768_v51 = vmul.f32 0.5, %v2577_v36 }
 0x2ed   : > { %v1168_v39 = vadd.f32 1.0, %v1152_v59  ;;  %v807_v61 = vsel %vm791_vm6, 1.0, %v2170_v33  ;;  %v850_v3 = vmul.f32 0.3275911, %v2725_v47  ;;  %v1071_v62 = vmul.f32 %v1055_v41, %v2684_v32 }
 0x2ee   : > { %v1143_v45 = vmul.f32 %v1127_v60, %v807_v61  ;;  %v986_v53 = vadd.f32 -0.28449672, %v970_v28  ;;  %v2742_v42 = vmul.f32 0.70710677, %v2728_v46  ;;  %v2747_v36 = vadd.f32 %v2529_v40, %v725_v8 }
 0x2ef   : > { %v2744_v13 = vpop.eup %1943  ;;  %v1184_v56 = vmul.f32 %v1168_v39, %v768_v51  ;;  %v866_v52 = vadd.f32 1.0, %v850_v3  ;;  %v730_v44 = vmul.f32 %v2523_v34, %v707_v17  ;;  %v759_v11 = vmul.f32 0.5, %v2592_v30 }
 0x2f0   : > { %v1159_v50 = vadd.f32 1.0, %v1143_v45  ;;  %v1002_v58 = vmul.f32 %v2695_v55, %v986_v53  ;;  %v911_v26 = vmul.f32 1.0614054, %v2744_v13  ;;  %v661_v32 = vmul.f32 0.0078125, %v644_v43 }
 0x2f1   : > { %v1207_v57 = vmul.f32 %v2663_v35, %v1184_v56  ;;  %1949 = vrcp.f32 %v866_v52  ;;  %v1946_v12 = vpop.eup %1945  ;;  %v825_v14 = vand.u32 2147483647, %v2742_v42  ;;  %v1097_v18 = vmul.f32 1.442695, %v1071_v62 }
 0x2f2   : > { %v1175_v9 = vmul.f32 %v1159_v50, %v759_v11  ;;  %v1018_v63 = vadd.f32 0.2548296, %v1002_v58  ;;  %v927_v49 = vadd.f32 -1.4531521, %v911_v26  ;;  %v2756_v54 = vmul.f32 0.70710677, %v2747_v36 }
 0x2f3   : > { %1234 = vadd.xlane.f32.xlu1 %v1207_v57  ;;  %v2759_v30 = vadd.f32 %v2529_v40, %v730_v44  ;;  %v841_v19 = vmul.f32 0.3275911, %v825_v14  ;;  %v677_v25 = vadd.f32 1e-05, %v661_v32  ;;  %vm794_vm7 = vcmp.ge.f32.partialorder %v2639_v6, 0.0 }
 0x2f4   : > { %v1198_v23 = vmul.f32 %v2663_v35, %v1175_v9  ;;  %v1034_v10 = vmul.f32 %v2695_v55, %v1018_v63  ;;  %v943_v21 = vmul.f32 %v2744_v13, %v927_v49  ;;  %v2765_v31 = vand.u32 2147483647, %v2756_v54 }
 0x2f5   : > { %v1948_v37 = vpop.eup %1947  ;;  %v857_v29 = vadd.f32 1.0, %v841_v19  ;;  %1951 = vpow2.f32 %v1097_v18  ;;  %v1058_v38 = vsub.f32 0.0, %v2725_v47  ;;  %v2771_v55 = vmul.f32 0.70710677, %v2759_v30 }
 0x2f6   : > { %1216 = vadd.xlane.f32.xlu0 %v1198_v23  ;;  %v1114_v16 = vmul.f32 %v1946_v12, %v1034_v10  ;;  %v959_v20 = vadd.f32 1.4214138, %v943_v21  ;;  %v844_v48 = vmul.f32 0.3275911, %v2765_v31  ;;  %v710_v59 = vmul.f32 %v2621_v7, %v2509_v4 }
 0x2f7   : > { %1953 = vrcp.f32 %v857_v29  ;;  %v810_v6 = vsel %vm794_vm7, 1.0, %v2170_v33  ;;  %v2778_v8 = vand.u32 2147483647, %v2771_v55  ;;  %v762_v39 = vmul.f32 0.5, %v2627_v15 }
 0x2f8   : > { %v1130_v22 = vsub.f32 1.0, %v1114_v16  ;;  %v975_v41 = vmul.f32 %v2744_v13, %v959_v20  ;;  %1955 = vrsqrt.f32 %v677_v25  ;;  %v860_v17 = vadd.f32 1.0, %v844_v48 }
 0x2f9   : > { %v1074_v61 = vmul.f32 %v1058_v38, %v2725_v47  ;;  %v733_v3 = vmul.f32 %v2523_v34, %v710_v59  ;;  %v701_v43 = vmul.f32 %v1948_v37, %v2504_v0  ;;  %v1049_v53 = vsub.f32 0.0, %v825_v14 }
 0x2fa   : > { %v1146_v60 = vmul.f32 %v1130_v22, %v810_v6  ;;  %v991_v28 = vadd.f32 -0.28449672, %v975_v41  ;;  %1957 = vrcp.f32 %v860_v17  ;;  %v849_v62 = vmul.f32 0.3275911, %v2778_v8 }
 0x2fb   : > { %v2780_v51 = vpop.eup %1949  ;;  %v2790_v56 = vadd.f32 %v2529_v40, %v733_v3  ;;  %v724_v47 = vmul.f32 %v2523_v34, %v701_v43  ;;  %vm799_vm8 = vcmp.ge.f32.partialorder %v2675_v27, 0.0  ;;  %v1103_v0 = vmul.f32 1.442695, %v1074_v61 }
 0x2fc   : > { %v1162_v4 = vadd.f32 1.0, %v1146_v60  ;;  %v1007_v7 = vmul.f32 %v2744_v13, %v991_v28  ;;  %v914_v45 = vmul.f32 1.0614054, %v2780_v51  ;;  %v865_v11 = vadd.f32 1.0, %v849_v62 }
 0x2fd   : > { %v2795_v50 = vmul.f32 0.70710677, %v2790_v56  ;;  %v2801_v57 = vadd.f32 %v2529_v40, %v724_v47  ;;  %v1065_v9 = vmul.f32 %v1049_v53, %v825_v14  ;;  %v1052_v63 = vsub.f32 0.0, %v2765_v31 }
 0x2fe   : > { %v1178_v52 = vmul.f32 %v1162_v4, %v762_v39  ;;  %v1023_v15 = vadd.f32 0.2548296, %v1007_v7  ;;  %v930_v44 = vadd.f32 -1.4531521, %v914_v45  ;;  %1959 = vrcp.f32 %v865_v11 }
 0x2ff   : > { %v1952_v12 = vpop.eup %1951  ;;  %v2805_v49 = vand.u32 2147483647, %v2795_v50  ;;  %1961 = vpow2.f32 %v1103_v0  ;;  %v815_v14 = vsel %vm799_vm8, 1.0, %v2170_v33  ;;  %v2816_v16 = vmul.f32 0.70710677, %v2801_v57 }
 0x300   : > { %v1201_v58 = vmul.f32 %v2663_v35, %v1178_v52  ;;  %v1039_v26 = vmul.f32 %v2744_v13, %v1023_v15  ;;  %v946_v32 = vmul.f32 %v2780_v51, %v930_v44  ;;  %v1085_v29 = vmul.f32 1.442695, %v1065_v9 }
 0x301   : > { %v2807_v18 = vpop.eup %1953  ;;  %v852_v19 = vmul.f32 0.3275911, %v2805_v49  ;;  %v1068_v38 = vmul.f32 %v1052_v63, %v2765_v31  ;;  %v2822_v6 = vand.u32 2147483647, %v2816_v16  ;;  %v1057_v28 = vsub.f32 0.0, %v2778_v8 }
 0x302   : > { %1222 = vadd.xlane.f32.xlu1 %v1201_v58  ;;  %v1119_v23 = vmul.f32 %v1952_v12, %v1039_v26  ;;  %v962_v10 = vadd.f32 1.4214138, %v946_v32  ;;  %v1956_v21 = vpop.eup %1955  ;;  %v905_v13 = vmul.f32 1.0614054, %v2807_v18  ;;  %v767_v39 = vmul.f32 0.5, %v2655_v1 }
 0x303   : > { %v868_v48 = vadd.f32 1.0, %v852_v19  ;;  %v709_v27 = vmul.f32 %v1956_v21, %v2512_v5  ;;  %v843_v3 = vmul.f32 0.3275911, %v2822_v6  ;;  %v1091_v7 = vmul.f32 1.442695, %v1068_v38 }
 0x304   : > { %v1135_v25 = vsub.f32 1.0, %v1119_v23  ;;  %v978_v37 = vmul.f32 %v2780_v51, %v962_v10  ;;  %v921_v20 = vadd.f32 -1.4531521, %v905_v13  ;;  %v2819_v22 = vpop.eup %1957  ;;  %v1073_v44 = vmul.f32 %v1057_v28, %v2778_v8 }
 0x305   : > { %v908_v60 = vmul.f32 1.0614054, %v2819_v22  ;;  %1963 = vrcp.f32 %v868_v48  ;;  %v859_v53 = vadd.f32 1.0, %v843_v3  ;;  %v732_v62 = vmul.f32 %v2523_v34, %v709_v27 }
 0x306   : > { %v1151_v41 = vmul.f32 %v1135_v25, %v815_v14  ;;  %v994_v59 = vadd.f32 -0.28449672, %v978_v37  ;;  %v937_v17 = vmul.f32 %v2807_v18, %v921_v20  ;;  %1965 = vpow2.f32 %v1085_v29 }
 0x307   : > { %v924_v4 = vadd.f32 -1.4531521, %v908_v60  ;;  %v1060_v47 = vsub.f32 0.0, %v2805_v49  ;;  %1967 = vrcp.f32 %v859_v53  ;;  %vm802_vm9 = vcmp.ge.f32.partialorder %v2717_v24, 0.0 }
 0x308   : > { %v1167_v31 = vadd.f32 1.0, %v1151_v41  ;;  %v1010_v61 = vmul.f32 %v2780_v51, %v994_v59  ;;  %v953_v43 = vadd.f32 1.4214138, %v937_v17  ;;  %v2832_v52 = vpop.eup %1959  ;;  %v2843_v12 = vadd.f32 %v2529_v40, %v732_v62 }
 0x309   : > { %v940_v1 = vmul.f32 %v2819_v22, %v924_v4  ;;  %v913_v58 = vmul.f32 1.0614054, %v2832_v52  ;;  %v1962_v26 = vpop.eup %1961  ;;  %vm793_vm10 = vcmp.ge.f32.partialorder %v2742_v42, 0.0  ;;  %1969 = vpow2.f32 %v1091_v7 }
 0x30a   : > { %v1183_v45 = vmul.f32 %v1167_v31, %v767_v39  ;;  %v1026_v5 = vadd.f32 0.2548296, %v1010_v61  ;;  %v969_v15 = vmul.f32 %v2807_v18, %v953_v43  ;;  %v770_v63 = vmul.f32 0.5, %v2707_v2 }
 0x30b   : > { %v956_v32 = vadd.f32 1.4214138, %v940_v1  ;;  %v929_v8 = vadd.f32 -1.4531521, %v913_v58  ;;  %v1101_v10 = vmul.f32 1.442695, %v1073_v44  ;;  %v1076_v19 = vmul.f32 %v1060_v47, %v2805_v49 }
 0x30c   : > { %v1206_v0 = vmul.f32 %v2663_v35, %v1183_v45  ;;  %v1042_v11 = vmul.f32 %v2780_v51, %v1026_v5  ;;  %v985_v34 = vadd.f32 -0.28449672, %v969_v15  ;;  %v2852_v40 = vmul.f32 0.70710677, %v2843_v12 }
 0x30d   : > { %v972_v23 = vmul.f32 %v2819_v22, %v956_v32  ;;  %v945_v13 = vmul.f32 %v2832_v52, %v929_v8  ;;  %v818_v42 = vsel %vm802_vm9, 1.0, %v2170_v33  ;;  %v809_v2 = vsel %vm793_vm10, 1.0, %v2170_v33 }
 0x30e   : > { %1232 = vadd.xlane.f32.xlu0 %v1206_v0  ;;  %v1122_v9 = vmul.f32 %v1962_v26, %v1042_v11  ;;  %v1001_v51 = vmul.f32 %v2807_v18, %v985_v34  ;;  %v1051_v48 = vsub.f32 0.0, %v2822_v6  ;;  %1971 = vpow2.f32 %v1101_v10 }
 0x30f   : > { %v2854_v14 = vpop.eup %1963  ;;  %v988_v37 = vadd.f32 -0.28449672, %v972_v23  ;;  %v961_v29 = vadd.f32 1.4214138, %v945_v13  ;;  %v2865_v27 = vand.u32 2147483647, %v2852_v40 }
 0x310   : > { %v1138_v21 = vsub.f32 1.0, %v1122_v9  ;;  %v1017_v25 = vadd.f32 0.2548296, %v1001_v51  ;;  %v916_v38 = vmul.f32 1.0614054, %v2854_v14  ;;  %v1966_v49 = vpop.eup %1965  ;;  %vm796_vm11 = vcmp.ge.f32.partialorder %v2756_v54, 0.0 }
 0x311   : > { %v1004_v59 = vmul.f32 %v2819_v22, %v988_v37  ;;  %v977_v17 = vmul.f32 %v2832_v52, %v961_v29  ;;  %v1107_v28 = vmul.f32 1.442695, %v1076_v19  ;;  %v851_v61 = vmul.f32 0.3275911, %v2865_v27  ;;  %v2870_v3 = vpop.eup %1967 }
 0x312   : > { %v1154_v20 = vmul.f32 %v1138_v21, %v818_v42  ;;  %v1033_v41 = vmul.f32 %v2807_v18, %v1017_v25  ;;  %v932_v60 = vadd.f32 -1.4531521, %v916_v38  ;;  %v1067_v7 = vmul.f32 %v1051_v48, %v2822_v6 }
 0x313   : > { %v1020_v31 = vadd.f32 0.2548296, %v1004_v59  ;;  %v993_v43 = vadd.f32 -0.28449672, %v977_v17  ;;  %v907_v53 = vmul.f32 1.0614054, %v2870_v3  ;;  %v1970_v15 = vpop.eup %1969  ;;  %1973 = vpow2.f32 %v1107_v28 }
 0x314   : > { %v1170_v24 = vadd.f32 1.0, %v1154_v20  ;;  %v1113_v39 = vmul.f32 %v1966_v49, %v1033_v41  ;;  %v948_v4 = vmul.f32 %v2854_v14, %v932_v60  ;;  %v867_v62 = vadd.f32 1.0, %v851_v61 }
 0x315   : > { %v1036_v5 = vmul.f32 %v2819_v22, %v1020_v31  ;;  %v1009_v44 = vmul.f32 %v2832_v52, %v993_v43  ;;  %v923_v58 = vadd.f32 -1.4531521, %v907_v53  ;;  %v1089_v34 = vmul.f32 1.442695, %v1067_v7 }
 0x316   : > { %v1186_v18 = vmul.f32 %v1170_v24, %v770_v63  ;;  %v1129_v45 = vsub.f32 1.0, %v1113_v39  ;;  %v964_v47 = vadd.f32 1.4214138, %v948_v4  ;;  %1975 = vrcp.f32 %v867_v62 }
 0x317   : > { %v1116_v11 = vmul.f32 %v1970_v15, %v1036_v5  ;;  %v1025_v26 = vadd.f32 0.2548296, %v1009_v44  ;;  %v761_v22 = vmul.f32 0.5, %v2728_v46  ;;  %v939_v8 = vmul.f32 %v2870_v3, %v923_v58 }
 0x318   : > { %v1209_v1 = vmul.f32 %v2663_v35, %v1186_v18  ;;  %v1145_v0 = vmul.f32 %v1129_v45, %v809_v2  ;;  %v980_v6 = vmul.f32 %v2854_v14, %v964_v47  ;;  %v812_v63 = vsel %vm796_vm11, 1.0, %v2170_v33  ;;  %v1972_v10 = vpop.eup %1971 }
 0x319   : > { %v1132_v9 = vsub.f32 1.0, %v1116_v11  ;;  %v1041_v51 = vmul.f32 %v2832_v52, %v1025_v26  ;;  %v764_v13 = vmul.f32 0.5, %v2747_v36  ;;  %v955_v42 = vadd.f32 1.4214138, %v939_v8 }
 0x31a   : > { %1238 = vadd.xlane.f32.xlu1 %v1209_v1  ;;  %v1161_v32 = vadd.f32 1.0, %v1145_v0  ;;  %v996_v23 = vadd.f32 -0.28449672, %v980_v6  ;;  %vm801_vm12 = vcmp.ge.f32.partialorder %v2771_v55, 0.0  ;;  %1977 = vpow2.f32 %v1089_v34 }
 0x31b   : > { %v1148_v19 = vmul.f32 %v1132_v9, %v812_v63  ;;  %v1121_v46 = vmul.f32 %v1972_v10, %v1041_v51  ;;  %v971_v54 = vmul.f32 %v2870_v3, %v955_v42  ;;  %v1059_v52 = vsub.f32 0.0, %v2865_v27 }
 0x31c   : > { %v1177_v21 = vmul.f32 %v1161_v32, %v761_v22  ;;  %v1012_v2 = vmul.f32 %v2854_v14, %v996_v23  ;;  %v817_v36 = vsel %vm801_vm12, 1.0, %v2170_v33  ;;  %v769_v17 = vmul.f32 0.5, %v2759_v30 }
 0x31d   : > { %v1164_v37 = vadd.f32 1.0, %v1148_v19  ;;  %v1137_v20 = vsub.f32 1.0, %v1121_v46  ;;  %v987_v48 = vadd.f32 -0.28449672, %v971_v54  ;;  %v1974_v49 = vpop.eup %1973  ;;  %v1075_v28 = vmul.f32 %v1059_v52, %v2865_v27 }
 0x31e   : > { %v1200_v25 = vmul.f32 %v2663_v35, %v1177_v21  ;;  %v1028_v29 = vadd.f32 0.2548296, %v1012_v2  ;;  %vm804_vm13 = vcmp.ge.f32.partialorder %v2795_v50, 0.0  ;;  %vm795_vm14 = vcmp.ge.f32.partialorder %v2816_v16, 0.0 }
 0x31f   : > { %v1180_v38 = vmul.f32 %v1164_v37, %v764_v13  ;;  %v1153_v55 = vmul.f32 %v1137_v20, %v817_v36  ;;  %v1003_v60 = vmul.f32 %v2870_v3, %v987_v48  ;;  %v1105_v5 = vmul.f32 1.442695, %v1075_v28 }
 0x320   : > { %1220 = vadd.xlane.f32.xlu0 %v1200_v25  ;;  %v1044_v41 = vmul.f32 %v2854_v14, %v1028_v29  ;;  %v1976_v59 = vpop.eup %1975  ;;  %v820_v14 = vsel %vm804_vm13, 1.0, %v2170_v33  ;;  %v772_v15 = vmul.f32 0.5, %v2790_v56  ;;  %v811_v11 = vsel %vm795_vm14, 1.0, %v2170_v33 }
 0x321   : > { %v1203_v24 = vmul.f32 %v2663_v35, %v1180_v38  ;;  %v1169_v39 = vadd.f32 1.0, %v1153_v55  ;;  %v915_v61 = vmul.f32 1.0614054, %v1976_v59  ;;  %v1019_v18 = vadd.f32 0.2548296, %v1003_v60 }
 0x322   : > { %v1124_v31 = vmul.f32 %v1974_v49, %v1044_v41  ;;  %1979 = vpow2.f32 %v1105_v5  ;;  %v763_v34 = vmul.f32 0.5, %v2801_v57  ;;  %vm803_vm15 = vcmp.ge.f32.partialorder %v2852_v40, 0.0 }
 0x323   : > { %1226 = vadd.xlane.f32.xlu1 %v1203_v24  ;;  %v1185_v43 = vmul.f32 %v1169_v39, %v769_v17  ;;  %v931_v7 = vadd.f32 -1.4531521, %v915_v61  ;;  %v1035_v45 = vmul.f32 %v2870_v3, %v1019_v18  ;;  %v819_v10 = vsel %vm803_vm15, 1.0, %v2170_v33 }
 0x324   : > { %v1140_v4 = vsub.f32 1.0, %v1124_v31  ;;  %v1978_v30 = vpop.eup %1977  ;;  %v771_v13 = vmul.f32 0.5, %v2843_v12  ;;  %v1262_v29 = vlaneseq  ;;  %vm1273_vm0 = vcmask 130112  }
 0x325   : > { %v1208_v53 = vmul.f32 %v2663_v35, %v1185_v43  ;;  %v947_v27 = vmul.f32 %v1976_v59, %v931_v7  ;;  %v1115_v50 = vmul.f32 %v1978_v30, %v1035_v45  ;;  %vm1338_vm1 = vcmask 1041409  }
 0x326   : > { %v1156_v62 = vmul.f32 %v1140_v4, %v820_v14  ;;  %v1263_v36 = vand.u32 127, %v1262_v29  ;;  %v2911_v48 = vshrl.u32 %v1262_v29, 7  ;;  %vm1340_vm2 = vcmask 1042434  }
 0x327   : > { %1236 = vadd.xlane.f32.xlu0 %v1208_v53  ;;  %v963_v44 = vadd.f32 1.4214138, %v947_v27  ;;  %v1131_v47 = vsub.f32 1.0, %v1115_v50  ;;  %vm1342_vm3 = vcmask 1043459   ;;  %vm1344_vm4 = vcmask 1044484  }
 0x328   : > { %v1172_v1 = vadd.f32 1.0, %v1156_v62  ;;  %v1268_v12 = vadd.s32 4294967288, %v1263_v36  ;;  %v1266_v55 = vsub.s32 %v1263_v36, %v2911_v48  ;;  %vm1346_vm5 = vcmask 1045509  }
 0x329   : > { %v979_v3 = vmul.f32 %v1976_v59, %v963_v44  ;;  %v1147_v58 = vmul.f32 %v1131_v47, %v811_v11  ;;  %vm1348_vm6 = vcmask 1046534   ;;  %vm1350_vm7 = vcmask 1047559  }
 0x32a   : > { %v1188_v0 = vmul.f32 %v1172_v1, %v772_v15  ;;  %v1271_v41 = vsub.s32 %v1268_v12, %v2911_v48  ;;  %vm1354_vm9 = vcmask 130048   ;;  %v1412_v29 = vsub.s32 4, %v2911_v48 }
 0x32b   : > { %v995_v6 = vadd.f32 -0.28449672, %v979_v3  ;;  %v1163_v22 = vadd.f32 1.0, %v1147_v58  ;;  %v1423_v36 = vsub.s32 5, %v2911_v48  ;;  %v1434_v12 = vsub.s32 6, %v2911_v48 }
 0x32c   : > { %v1211_v26 = vmul.f32 %v2663_v35, %v1188_v0  ;;  %v1980_v63 = vpop.eup %1979 }
 0x32d   : > { %v1011_v16 = vmul.f32 %v1976_v59, %v995_v6  ;;  %v1179_v32 = vmul.f32 %v1163_v22, %v763_v34 }
 0x32e   : > { %1242 = vadd.xlane.f32.xlu1 %v1211_v26  ;;  %v1244_v26 = vld [vmem:[%s2403_s16] sm:$0xff]  ;;  %s2095_s16 = scalar_lea.vmem %s2094_s9, 256 }
 0x32f   : > { %v1027_v9 = vadd.f32 0.2548296, %v1011_v16  ;;  %v1202_v56 = vmul.f32 %v2663_v35, %v1179_v32  ;;  %vm1245_vm8 = vcmp.eq.f32.partialorder %v1244_v26, 0.0  ;;  %p2097_p1 = scmp.lt.s32.totalorder %s2095_s16, %s2089_s2 }
 0x331   : > { %v1043_v8 = vmul.f32 %v1976_v59, %v1027_v9  ;;  %1224 = vadd.xlane.f32.xlu0 %v1202_v56  ;;  %p2098_p5 = por %p2097_p1, %p2096_p9 }
 0x333   : > { %v1123_v51 = vmul.f32 %v1980_v63, %v1043_v8  ;;  %p2099_p2 = pnand %p2098_p5, %p2092_p7 }
 0x335   : > { %v1139_v23 = vsub.f32 1.0, %v1123_v51 }
 0x337   : > { %v1155_v21 = vmul.f32 %v1139_v23, %v819_v10 }
 0x339   : > { %v1171_v57 = vadd.f32 1.0, %v1155_v21 }
 0x33b   : > { %v1187_v19 = vmul.f32 %v1171_v57, %v771_v13 }
 0x33d   : > { %v1210_v42 = vmul.f32 %v2663_v35, %v1187_v19  ;;  %v1368_v19 = vsub.s32 0, %v2911_v48 }
 0x33f   : > { %1240 = vadd.xlane.f32.xlu0 %v1210_v42 }
 0x36c   : > { %v1215_v46 = vpop.xlane.xlu1 %1214 }
 0x36d   : > { %v1272_v31 = vrot.slane %v1215_v46, %v1271_v41 }
 0x370   : > { %v1231_v25 = vpop.xlane.xlu1 %1230 }
 0x371   : > { %v1309_v62 = vrot.slane %v1231_v25, %v1271_v41  ;;  %v1379_v25 = vsub.s32 1, %v2911_v48 }
 0x373   : > { %v1213_v2 = vpop.xlane.xlu0 %1212 }
 0x374   : > { %v1267_v17 = vrot.slane %v1213_v2, %v1266_v55 }
 0x376   : > { %v1219_v54 = vpop.xlane.xlu1 %1218  ;;  %v1274_v14 = vsel %vm1273_vm0, %v1272_v31, %v1267_v17  ;;  %v1986_v31 = vld [vmem:[%s2393_s21 + $0x8] sm:$0xff] }
 0x377   : > { %v1282_v60 = vrot.slane %v1219_v54, %v1271_v41 }
 0x379   : > { %v1229_v37 = vpop.xlane.xlu0 %1228 }
 0x37a   : > { %v1305_v45 = vrot.slane %v1229_v37, %v1266_v55  ;;  %v1390_v37 = vsub.s32 2, %v2911_v48 }
 0x37c   : > { %v1310_v15 = vsel %vm1273_vm0, %v1309_v62, %v1305_v45 }
 0x380   : > { %v1235_v20 = vpop.xlane.xlu1 %1234 }
 0x381   : > { %v1318_v1 = vrot.slane %v1235_v20, %v1271_v41  ;;  %v1401_v20 = vsub.s32 3, %v2911_v48 }
 0x383   : > { %v1217_v52 = vpop.xlane.xlu0 %1216 }
 0x384   : > { %v1278_v59 = vrot.slane %v1217_v52, %v1266_v55 }
 0x386   : > { %v1283_v61 = vsel %vm1273_vm0, %v1282_v60, %v1278_v59 }
 0x387   : > { %v1339_v5 = vsel %vm1338_vm1, %v1283_v61, %v1274_v14  ;;  %v1988_v14 = vld [vmem:[%s2393_s21 + $0x10] sm:$0xff] }
 0x38f   : > { %v1223_v38 = vpop.xlane.xlu1 %1222 }
 0x390   : > { %v1291_v39 = vrot.slane %v1223_v38, %v1271_v41 }
 0x39b   : > { %v1233_v40 = vpop.xlane.xlu0 %1232 }
 0x39c   : > { %v1314_v50 = vrot.slane %v1233_v40, %v1266_v55 }
 0x39e   : > { %v1319_v0 = vsel %vm1273_vm0, %v1318_v1, %v1314_v50 }
 0x3a7   : > { %v1239_v49 = vpop.xlane.xlu1 %1238 }
 0x3a8   : > { %v1327_v11 = vrot.slane %v1239_v49, %v1271_v41 }
 0x3ad   : > { %v1221_v33 = vpop.xlane.xlu0 %1220 }
 0x3ae   : > { %v1287_v24 = vrot.slane %v1221_v33, %v1266_v55 }
 0x3b0   : > { %v1227_v28 = vpop.xlane.xlu1 %1226  ;;  %v1292_v43 = vsel %vm1273_vm0, %v1291_v39, %v1287_v24  ;;  %v1985_v39 = vld [vmem:[%s2393_s21 + $0x18] sm:$0xff] }
 0x3b1   : > { %v1300_v4 = vrot.slane %v1227_v28, %v1271_v41  ;;  %v1341_v53 = vsel %vm1340_vm2, %v1292_v43, %v1339_v5  ;;  %v1989_v5 = vld [vmem:[%s2393_s21 + $0x28] sm:$0xff] }
 0x3b4   : > { %v1237_v35 = vpop.xlane.xlu0 %1236 }
 0x3b5   : > { %v1323_v47 = vrot.slane %v1237_v35, %v1266_v55 }
 0x3b7   : > { %v1328_v6 = vsel %vm1273_vm0, %v1327_v11, %v1323_v47 }
 0x3bb   : > { %v1243_v3 = vpop.xlane.xlu1 %1242 }
 0x3bc   : > { %v1336_v22 = vrot.slane %v1243_v3, %v1271_v41 }
 0x3be   : > { %v1225_v18 = vpop.xlane.xlu0 %1224 }
 0x3bf   : > { %v1296_v7 = vrot.slane %v1225_v18, %v1266_v55  ;;  %v1987_v18 = vld [vmem:[%s2393_s21] sm:$0xff] }
 0x3c1   : > { %v1301_v30 = vsel %vm1273_vm0, %v1300_v4, %v1296_v7 }
 0x3c2   : > { %v1343_v27 = vsel %vm1342_vm3, %v1301_v30, %v1341_v53  ;;  %v1990_v53 = vld [vmem:[%s2393_s21 + $0x20] sm:$0xff] }
 0x3c3   : > { %v1345_v44 = vsel %vm1344_vm4, %v1310_v15, %v1343_v27 }
 0x3c4   : > { %v1347_v58 = vsel %vm1346_vm5, %v1319_v0, %v1345_v44  ;;  %v1991_v44 = vld [vmem:[%s2393_s21 + $0x30] sm:$0xff]  ;;  %v1992_v0 = vld [vmem:[%s2393_s21 + $0x38] sm:$0xff] }
 0x3c5   : > { %v1349_v32 = vsel %vm1348_vm6, %v1328_v6, %v1347_v58 }
 0x3cc   : > { %v1241_v34 = vpop.xlane.xlu0 %1240 }
 0x3cd   : > { %v1332_v16 = vrot.slane %v1241_v34, %v1266_v55  ;;  %v1445_v55 = vsub.s32 7, %v2911_v48 }
 0x3cf   : > { %v1337_v9 = vsel %vm1273_vm0, %v1336_v22, %v1332_v16  ;;  %v1993_v16 = vld [vmem:[%s2393_s21 + $0x40] sm:$0xff] }
 0x3d0   : > { %v1351_v56 = vsel %vm1350_vm7, %v1337_v9, %v1349_v32 }
 0x3d1   : > { %v1353_v8 = vsel %vm1245_vm8, -inf, %v1351_v56  ;;  %v1994_v56 = vld [vmem:[%s2393_s21 + $0x48] sm:$0xff] }
 0x3d2   : > { %v1355_v63 = vsel %vm1354_vm9, %v1353_v8, -inf }
 0x3d3   : > { %1356 = vmax.xlane.f32.xlu0 %v1355_v63 }
 0x460   : > { %v1357_v51 = vpop.xlane.xlu0 %1356 }
 0x461   : > { %v1358_v23 = vsub.f32 %v1353_v8, %v1357_v51 }
 0x463   : > { %v1359_v10 = vmul.f32 1.442695, %v1358_v23 }
 0x465   : > { %1981 = vpow2.f32 %v1359_v10 }
 0x46f   : > { %v1982_v21 = vpop.eup %1981 }
 0x470   : > { %v1361_v13 = vsel %vm1354_vm9, %v1982_v21, 0.0 }
 0x471   : > { %1362 = vadd.xlane.f32.xlu1 %v1361_v13 }
 0x4fe   : > { %v1363_v57 = vpop.xlane.xlu1 %1362 }
 0x4ff   : > { %1983 = vrcp.f32 %v1363_v57 }
 0x509   : > { %v1984_v42 = vpop.eup %1983 }
 0x50a   : > { %v1365_v46 = vmul.f32 %v1984_v42, %v1982_v21  ;;  %v1995_v42 = vld [vmem:[%s2393_s21 + $0x50] sm:$0xff] }
 0x50c   : > { %v1369_v2 = vrot.slane %v1365_v46, %v1368_v19  ;;  %v1380_v54 = vrot.slane %v1365_v46, %v1379_v25  ;;  %v1391_v52 = vrot.slane %v1365_v46, %v1390_v37  ;;  %v1402_v40 = vrot.slane %v1365_v46, %v1401_v20 }
 0x50d   : > { %v1413_v38 = vrot.slane %v1365_v46, %v1412_v29  ;;  %v1424_v33 = vrot.slane %v1365_v46, %v1423_v36  ;;  %v1435_v49 = vrot.slane %v1365_v46, %v1434_v12  ;;  %v1446_v35 = vrot.slane %v1365_v46, %v1445_v55  ;;  %v1997_v36 = vld [vmem:[%s2393_s21 + $0x60] sm:$0xff]  ;;  %v1998_v12 = vld [vmem:[%s2393_s21 + $0x68] sm:$0xff] }
 0x50e   : > { %1375 = vbcast.lane.b32.xlu1 %v1369_v2, 264  ;;  %1371 = vbcast.lane.b32.xlu0 %v1369_v2, 256  ;;  %v1996_v2 = vld [vmem:[%s2393_s21 + $0x58] sm:$0xff] }
 0x512   : > { %1382 = vbcast.lane.b32.xlu1 %v1380_v54, 256  ;;  %1393 = vbcast.lane.b32.xlu0 %v1391_v52, 256 }
 0x516   : > { %1386 = vbcast.lane.b32.xlu1 %v1380_v54, 264  ;;  %1404 = vbcast.lane.b32.xlu0 %v1402_v40, 256 }
 0x51a   : > { %1397 = vbcast.lane.b32.xlu1 %v1391_v52, 264  ;;  %1415 = vbcast.lane.b32.xlu0 %v1413_v38, 256 }
 0x51e   : > { %1408 = vbcast.lane.b32.xlu1 %v1402_v40, 264  ;;  %1426 = vbcast.lane.b32.xlu0 %v1424_v33, 256 }
 0x522   : > { %1419 = vbcast.lane.b32.xlu1 %v1413_v38, 264  ;;  %1437 = vbcast.lane.b32.xlu0 %v1435_v49, 256 }
 0x526   : > { %1430 = vbcast.lane.b32.xlu1 %v1424_v33, 264  ;;  %1448 = vbcast.lane.b32.xlu0 %v1446_v35, 256 }
 0x52a   : > { %1441 = vbcast.lane.b32.xlu1 %v1435_v49, 264 }
 0x52e   : > { %1452 = vbcast.lane.b32.xlu1 %v1446_v35, 264 }
 0x580   : > { %v1376_v41 = vpop.permute.xlu1 %1375  ;;  %v1372_v59 = vpop.permute.xlu0 %1371 }
 0x581   : > { %v1455_v61 = vmul.f32 %v1986_v31, %v1376_v41  ;;  %v1454_v43 = vmul.f32 %v1987_v18, %v1372_v59  ;;  %v1999_v31 = vld [vmem:[%s2393_s21 + $0x70] sm:$0xff] }
 0x583   : > { %v1470_v50 = vadd.f32 %v1455_v61, %v1454_v43  ;;  %v2000_v43 = vld [vmem:[%s2393_s21 + $0x78] sm:$0xff]  ;;  %s2967_s21 = scalar_lea.hbm %s3019_s7, %s1679_s18 }
 0x584   : > { %v1383_v24 = vpop.permute.xlu1 %1382  ;;  %v1394_v17 = vpop.permute.xlu0 %1393 }
 0x585   : > { %v1456_v45 = vmul.f32 %v1988_v14, %v1383_v24  ;;  %v1458_v62 = vmul.f32 %v1990_v53, %v1394_v17  ;;  %v1471_v6 = vrot.slane %v1470_v50, 4 }
 0x587   : > { %v1472_v23 = vadd.f32 %v1471_v6, %v1470_v50 }
 0x588   : > { %v1387_v60 = vpop.permute.xlu1 %1386  ;;  %v1405_v28 = vpop.permute.xlu0 %1404 }
 0x589   : > { %v1457_v48 = vmul.f32 %v1985_v39, %v1387_v60  ;;  %v1460_v47 = vmul.f32 %v1991_v44, %v1405_v28  ;;  %v1473_v52 = vrot.slane %v1472_v23, 2 }
 0x58b   : > { %v1477_v27 = vadd.f32 %v1457_v48, %v1456_v45  ;;  %v1474_v17 = vadd.f32 %v1473_v52, %v1472_v23 }
 0x58c   : > { %v1398_v4 = vpop.permute.xlu1 %1397  ;;  %v1416_v7 = vpop.permute.xlu0 %1415 }
 0x58d   : > { %v1459_v30 = vmul.f32 %v1989_v5, %v1398_v4  ;;  %v1478_v58 = vrot.slane %v1477_v27, 4  ;;  %v1462_v32 = vmul.f32 %v1993_v16, %v1416_v7 }
 0x58f   : > { %v1484_v15 = vadd.f32 %v1459_v30, %v1458_v62  ;;  %v1479_v63 = vadd.f32 %v1478_v58, %v1477_v27  ;;  %v1475_v27 = vrot.slane %v1474_v17, 1 }
 0x590   : > { %v1409_v1 = vpop.permute.xlu1 %1408  ;;  %v1427_v3 = vpop.permute.xlu0 %1426 }
 0x591   : > { %v1461_v11 = vmul.f32 %v1992_v0, %v1409_v1  ;;  %v1485_v34 = vrot.slane %v1484_v15, 4  ;;  %v1464_v46 = vmul.f32 %v1995_v42, %v1427_v3  ;;  %v1480_v37 = vrot.slane %v1479_v63, 2 }
 0x593   : > { %v1491_v26 = vadd.f32 %v1461_v11, %v1460_v47  ;;  %v1486_v10 = vadd.f32 %v1485_v34, %v1484_v15  ;;  %v1481_v59 = vadd.f32 %v1480_v37, %v1479_v63 }
 0x594   : > { %v1420_v22 = vpop.permute.xlu1 %1419  ;;  %v1438_v21 = vpop.permute.xlu0 %1437 }
 0x595   : > { %v1492_v9 = vrot.slane %v1491_v26, 4  ;;  %v1463_v8 = vmul.f32 %v1994_v56, %v1420_v22  ;;  %v1487_v20 = vrot.slane %v1486_v10, 2  ;;  %v1466_v33 = vmul.f32 %v1997_v36, %v1438_v21 }
 0x596   : > { %v1482_v45 = vrot.slane %v1481_v59, 1 }
 0x597   : > { %v1498_v51 = vadd.f32 %v1463_v8, %v1462_v32  ;;  %v1493_v57 = vadd.f32 %v1492_v9, %v1491_v26  ;;  %v1488_v60 = vadd.f32 %v1487_v20, %v1486_v10  ;;  %v1476_v26 = vadd.f32 %v1475_v27, %v1474_v17 }
 0x598   : > { %v1431_v13 = vpop.permute.xlu1 %1430  ;;  %v1449_v41 = vpop.permute.xlu0 %1448  ;;  %v1483_v47 = vadd.f32 %v1482_v45, %v1481_v59 }
 0x599   : > { %v1499_v19 = vrot.slane %v1498_v51, 4  ;;  %v1465_v25 = vmul.f32 %v1996_v2, %v1431_v13  ;;  %v1494_v38 = vrot.slane %v1493_v57, 2  ;;  %v1468_v61 = vmul.f32 %v1999_v31, %v1449_v41 }
 0x59a   : > { %v1489_v53 = vrot.slane %v1488_v60, 1  ;;  %v1534_v32 = vsel %vm1338_vm1, %v1483_v47, %v1476_v26 }
 0x59b   : > { %v1500_v54 = vadd.f32 %v1499_v19, %v1498_v51  ;;  %v1505_v40 = vadd.f32 %v1465_v25, %v1464_v46  ;;  %v1495_v48 = vadd.f32 %v1494_v38, %v1493_v57 }
 0x59c   : > { %v1442_v29 = vpop.permute.xlu1 %1441  ;;  %v1490_v58 = vadd.f32 %v1489_v53, %v1488_v60 }
 0x59d   : > { %v1467_v49 = vmul.f32 %v1998_v12, %v1442_v29  ;;  %v1501_v55 = vrot.slane %v1500_v54, 2  ;;  %v1506_v35 = vrot.slane %v1505_v40, 4  ;;  %v1496_v50 = vrot.slane %v1495_v48, 1 }
 0x59e   : > { %v1535_v8 = vsel %vm1340_vm2, %v1490_v58, %v1534_v32 }
 0x59f   : > { %v1512_v24 = vadd.f32 %v1467_v49, %v1466_v33  ;;  %v1507_v28 = vadd.f32 %v1506_v35, %v1505_v40  ;;  %v1502_v7 = vadd.f32 %v1501_v55, %v1500_v54  ;;  %v1497_v6 = vadd.f32 %v1496_v50, %v1495_v48 }
 0x5a0   : > { %v1453_v39 = vpop.permute.xlu1 %1452 }
 0x5a1   : > { %v1513_v18 = vrot.slane %v1512_v24, 4  ;;  %v1469_v4 = vmul.f32 %v2000_v43, %v1453_v39  ;;  %v1508_v14 = vrot.slane %v1507_v28, 2  ;;  %v1503_v44 = vrot.slane %v1502_v7, 1 }
 0x5a2   : > { %v1536_v51 = vsel %vm1342_vm3, %v1497_v6, %v1535_v8 }
 0x5a3   : > { %v1514_v5 = vadd.f32 %v1513_v18, %v1512_v24  ;;  %v1519_v30 = vadd.f32 %v1469_v4, %v1468_v61  ;;  %v1509_v62 = vadd.f32 %v1508_v14, %v1507_v28  ;;  %v1504_v16 = vadd.f32 %v1503_v44, %v1502_v7 }
 0x5a5   : > { %v1515_v15 = vrot.slane %v1514_v5, 2  ;;  %v1520_v1 = vrot.slane %v1519_v30, 4  ;;  %v1510_v0 = vrot.slane %v1509_v62, 1  ;;  %v1537_v10 = vsel %vm1344_vm4, %v1504_v16, %v1536_v51 }
 0x5a7   : > { %v1516_v11 = vadd.f32 %v1515_v15, %v1514_v5  ;;  %v1521_v3 = vadd.f32 %v1520_v1, %v1519_v30  ;;  %v1511_v9 = vadd.f32 %v1510_v0, %v1509_v62 }
 0x5a9   : > { %v1517_v34 = vrot.slane %v1516_v11, 1  ;;  %v1522_v22 = vrot.slane %v1521_v3, 2  ;;  %v1538_v13 = vsel %vm1346_vm5, %v1511_v9, %v1537_v10 }
 0x5ab   : > { %v1523_v56 = vadd.f32 %v1522_v22, %v1521_v3  ;;  %v1518_v63 = vadd.f32 %v1517_v34, %v1516_v11 }
 0x5ad   : > { %v1524_v23 = vrot.slane %v1523_v56, 1  ;;  %v1539_v57 = vsel %vm1348_vm6, %v1518_v63, %v1538_v13 }
 0x5af   : > { %v1525_v21 = vadd.f32 %v1524_v23, %v1523_v56 }
 0x5b1   : > { %v1540_v19 = vsel %vm1350_vm7, %v1525_v21, %v1539_v57 }
 0x5b2   : > { %1542 = vst [vmem:[%s348_s11] sm:$0xff] %v1540_v19 }
 0x5b3   : > { %2102 = shalt.err (!%p2099_p2)
}
 0x5b4   : > { %s2103_s13 = scalar_lea.hbm %s2967_s21, 128  ;;  %s2107_s29 = scalar_lea.hbm %s3019_s7, 256 }
 0x5b5   : > { %p2104_p6 = scmp.ne.s32.totalorder %s2967_s21, %s2103_s13  ;;  %p2108_p12 = scmp.lt.u32.totalorder %s2967_s21, %s3019_s7 }
 0x5b6   : > { %p2109_p11 = scmp.lt.u32.totalorder %s2107_s29, %s2103_s13  ;;  %p2111_p10 = scmp.lt.u32.totalorder %s2103_s13, %s2967_s21 }
 0x5b7   : > { %p2105_p8 = pnand %p2104_p6, %p3050_p13 }
 0x5b8   : > { %p2110_p0 = por %p2109_p11, %p2108_p12 }
 0x5b9   : > { %p2106_p4 = pneg %p2105_p8 }
 0x5ba   : > { %p2112_p3 = por %p2111_p10, %p2110_p0 }
 0x5bc   : > { %p2113_p7 = pnand %p2112_p3, %p2106_p4 }
 0x5be   : > { %2116 = shalt.err (!%p2113_p7)
}
 0x5bf   : > { %1828 = dma.vmem_to_hbm [thread:$0]  (%p3050_p13), %s2969_s14, 128, %s2967_s21, %s1544_s28  }
 0x5c0 PF: > { %s1569_s23 = sand.u32 1, %s2151_s24   ;;  %p3051_p9 = scmp.ne.s32.totalorder %s3033_s8, 0 }
 0x5c1   : > { %p3052_p1 = scmp.ge.s32.totalorder %s2163_s27, 2  ;;  %s1570_s10 = scalar_lea.sflag [#allocation4], %s1569_s23 }
 0x5c3   : > { %p1842_p5 = pnand %p3052_p1, %p3051_p9 }
 0x5c5   : > { %2146 = dma.done.wait (!%p1842_p5), %s1570_s10, 128  }
 0x5c6   : > { %2148 = vsyncadd (!%p1842_p5), %s1570_s10, 4294967168  ;;  %s3053_s27 = sld [smem:[#allocation14_spill]]  ;;  %s3054_s0 = sld [smem:[#allocation13_spill]] }
 0x5c7   : > { %s3055_s26 = sld [smem:[#allocation15_spill]]  ;;  %s3056_s24 = smov %s2155_s25 }
 0x5cc   : > { %p23_p2 = scmp.ge.s32.totalorder %s3053_s27, 4   ;;  %s3057_s25 = smov %s3054_s0 }
 0x5ce   :  { %25 = sbr.rel (!%p23_p2) target bundleno = 10 (0xa), region = 110 }
 0x5d5   :  { %1575 = vsyncpa [#allocation3], 1 }
 0x5d6   :  { %1577 = vsyncpa [#allocation3 + $0x1], 1 }
 0x5d7   :  { %1578 = vsyncpa [#allocation6], 1 }
 0x5d8   :  { %1580 = vsyncpa [#allocation6 + $0x1], 1 }
 0x5d9   :  { %1581 = vsyncpa [#allocation4], 1 }
 0x5da   :  { %1583 = vsyncpa [#allocation4 + $0x1], 1 }

</bundles_post_ra>
